<compile_context>
chip_gen: v7x
topology: tpu7x:2x2x1
jax: 0.10.0
libtpu: 0.0.40
codegen_flags: <defaults>
</compile_context>

<pallas_src>
import jax
import jax.numpy as jnp
from jax.experimental import pallas as pl
from jax.experimental.pallas import tpu as pltpu


def _round_up(x, m):
    return ((x + m - 1) // m) * m


def _make_knnconv_kernel(num_layers, k, compute_dtype):
    """Kernel: `num_layers` x Linear(+ReLU) on a (tile_n*K, F0) slab, then max over K."""

    def kernel(x_ref, *refs):
        # refs = (w0, b0, w1, b1, ..., out_ref)
        out_ref = refs[-1]
        params = refs[:-1]

        h = x_ref[...]                                            # (tile_n*K, F0) compute_dtype

        # Hidden layers: Linear -> bias -> ReLU, f32 accumulate, bf16 for next MXU pass.
        for i in range(num_layers - 1):
            w = params[2 * i][...]                                # (F_in, F_out) compute_dtype
            b = params[2 * i + 1][...]                            # (1, F_out)    f32
            acc = jnp.dot(h, w, preferred_element_type=jnp.float32) + b
            h = jnp.maximum(acc, 0.0).astype(compute_dtype)

        # Final layer: matmul only.  Bias-add and ReLU are deferred until AFTER the
        # K-max (max(x_k) + b == max(x_k + b); relu is monotone), so they run on a
        # K-times smaller slab.  Results are bit-identical to relu(x@W + b) -> max.
        w = params[2 * (num_layers - 1)][...]                     # (F_in, F_pad) compute_dtype
        b = params[2 * (num_layers - 1) + 1][...]                 # (1, F_pad)    f32
        acc = jnp.dot(h, w, preferred_element_type=jnp.float32)   # (tile_n*K, F_pad) f32

        rows, f = acc.shape
        pooled = jnp.max(acc.reshape(rows // k, k, f), axis=1)    # (tile_n, F_pad)  max over K
        pooled = jnp.maximum(pooled + b, 0.0)                     # deferred bias + ReLU
        out_ref[...] = pooled.astype(out_ref.dtype)

    return kernel


def knn_conv(agg_feat, weights, biases, *, tile_n=256, compute_dtype=jnp.bfloat16):
    """agg_feat: (N, K, F0).  weights[i]: (F_in, F_out) (i.e. torch W^T).  biases[i]: (F_out,)."""
    n, k, f0 = agg_feat.shape
    num_layers = len(weights)
    f_last = weights[-1].shape[1]
    out_dtype = agg_feat.dtype

    # --- Tile / padding choices ----------------------------------------------
    # tile_n: multiple of 8 (sublane rule), no larger than the padded node count.
    tile_n = _round_up(max(8, min(tile_n, _round_up(n, 8))), 8)
    n_pad = _round_up(n, tile_n)
    grid = n_pad // tile_n
    # Lane-dense output: pad the last layer's output dim to a multiple of 128.
    f_pad = _round_up(f_last, 128)

    # --- Wrapper-side layout work (XLA-side, cheap) ---------------------------
    x = agg_feat
    if n_pad != n:
        x = jnp.pad(x, ((0, n_pad - n), (0, 0), (0, 0)))
    x2d = x.reshape(n_pad * k, f0).astype(compute_dtype)          # 2-D matmul slab

    ws, bs = [], []
    for li, (w, b) in enumerate(zip(weights, biases)):
        if li == num_layers - 1 and f_pad != f_last:
            w = jnp.pad(w, ((0, 0), (0, f_pad - f_last)))         # zero cols -> 0 outputs, sliced off
            b = jnp.pad(b, ((0, f_pad - f_last),))
        ws.append(w.astype(compute_dtype))
        bs.append(b.reshape(1, -1).astype(jnp.float32))

    # --- Specs -----------------------------------------------------------------
    in_specs = [pl.BlockSpec((tile_n * k, f0), lambda i: (i, 0))]
    flat_params = []
    for w, b in zip(ws, bs):
        in_specs.append(pl.BlockSpec(w.shape, lambda i: (0, 0)))  # whole weight resident
        in_specs.append(pl.BlockSpec(b.shape, lambda i: (0, 0)))
        flat_params.extend([w, b])
    out_spec = pl.BlockSpec((tile_n, f_pad), lambda i: (i, 0))

    # --- VMEM budget (double-buffered I/O + params + f32 intermediates) --------
    itemsize = jnp.dtype(compute_dtype).itemsize
    in_block_bytes = tile_n * k * f0 * itemsize
    out_block_bytes = tile_n * f_pad * jnp.dtype(out_dtype).itemsize
    param_bytes = sum(int(w.size) * w.dtype.itemsize + int(b.size) * b.dtype.itemsize
                      for w, b in zip(ws, bs))
    max_f = max(int(w.shape[1]) for w in ws)                       # includes f_pad
    interm_bytes = 2 * tile_n * k * max_f * 4
    vmem_est = 2 * in_block_bytes + 2 * out_block_bytes + 2 * param_bytes + interm_bytes
    vmem_limit = int(min(max(4 * vmem_est, 16 * 1024 * 1024), 32 * 1024 * 1024))

    kernel = _make_knnconv_kernel(num_layers, k, compute_dtype)

    out_padded = pl.pallas_call(
        kernel,
        out_shape=jax.ShapeDtypeStruct((n_pad, f_pad), out_dtype),
        grid_spec=pltpu.PrefetchScalarGridSpec(
            num_scalar_prefetch=0,
            grid=(grid,),
            in_specs=in_specs,
            out_specs=out_spec,
        ),
        compiler_params=pltpu.CompilerParams(
            dimension_semantics=("parallel",),
            vmem_limit_bytes=vmem_limit,
        ),
    )(x2d, *flat_params)

    return out_padded[:n, :f_last]


def knn_conv_reference(agg_feat, weights, biases, compute_dtype=jnp.float32):
    """Pure-JAX reference with original op order (relu after every linear, then max)."""
    num_layers = len(weights)
    h = agg_feat.astype(compute_dtype)
    for i, (w, b) in enumerate(zip(weights, biases)):
        y = jnp.einsum("nkf,fg->nkg", h, w.astype(compute_dtype),
                       preferred_element_type=jnp.float32) + b.astype(jnp.float32)
        y = jnp.maximum(y, 0.0)
        h = y if i == num_layers - 1 else y.astype(compute_dtype)
    return jnp.max(h, axis=1).astype(agg_feat.dtype)


if __name__ == "__main__":
    # Small deterministic setup consistent with the module:
    #   sizes = [32, 64, 64] -> two Linear layers; N nodes, K mailbox neighbors.
    # N=100 is deliberately NOT a multiple of the tile to exercise ragged handling.
    # TODO(synk): the DGL mailbox gather (graph message passing) happens upstream of
    # this module; the kernel consumes the already-gathered (N, K, F0) tensor.
    sizes = [32, 64, 64]
    N, K = 100, 8

    key = jax.random.PRNGKey(0)
    k_x, *k_params = jax.random.split(key, 1 + 2 * (len(sizes) - 1))

    agg_feat = jax.random.normal(k_x, (N, K, sizes[0]), dtype=jnp.float32)

    weights, biases = [], []
    for li in range(1, len(sizes)):
        f_in, f_out = sizes[li - 1], sizes[li]
        kw = k_params[2 * (li - 1)]
        kb = k_params[2 * (li - 1) + 1]
        bound = 1.0 / (f_in ** 0.5)  # torch.nn.Linear default init scale
        weights.append(jax.random.uniform(kw, (f_in, f_out), jnp.float32, -bound, bound))
        biases.append(jax.random.uniform(kb, (f_out,), jnp.float32, -bound, bound))

    out = knn_conv(agg_feat, weights, biases)          # default tile_n=256, bf16 MXU path
    out = jax.block_until_ready(out)
    assert out.shape == (N, sizes[-1])

    # Check against a reference using the same bf16-operand / f32-accumulate precision
    # as the kernel (only residual difference is MXU vs XLA dot reduction order).
    ref_matched = knn_conv_reference(agg_feat, weights, biases, compute_dtype=jnp.bfloat16)
    assert jnp.allclose(out, ref_matched, atol=5e-3, rtol=5e-3), \
        "mismatch vs matched-precision reference"

    # Loose sanity check against the full-f32 PyTorch-equivalent math.
    ref_f32 = knn_conv_reference(agg_feat, weights, biases, compute_dtype=jnp.float32)
    assert jnp.allclose(out, ref_f32, atol=1e-1, rtol=1e-1), \
        "mismatch vs f32 reference beyond bf16 tolerance"

    print("KERNEL_OK")
</pallas_src>

<mosaic_0001>
module attributes {stable_mosaic.version = 11 : i64} {
  func.func @kernel(%arg0: i32, %arg1: memref<832x32xbf16, #tpu.memory_space<vmem>>, %arg2: memref<32x64xbf16, #tpu.memory_space<vmem>>, %arg3: memref<1x64xf32, #tpu.memory_space<vmem>>, %arg4: memref<64x128xbf16, #tpu.memory_space<vmem>>, %arg5: memref<1x128xf32, #tpu.memory_space<vmem>>, %arg6: memref<104x128xf32, #tpu.memory_space<vmem>>) attributes {dimension_semantics = [#tpu.dimension_semantics<parallel>], iteration_bounds = array<i64: 1>, scalar_prefetch = 0 : i64, scratch_operands = 0 : i64, tpu.core_type = #tpu.core_type<tc>, window_params = [{transform_indices = @transform_0, window_bounds = array<i64: 832, 32>}, {pipeline_mode = #tpu.pipeline_mode<synchronous>, transform_indices = @transform_1, window_bounds = array<i64: 32, 64>}, {pipeline_mode = #tpu.pipeline_mode<synchronous>, transform_indices = @transform_2, window_bounds = array<i64: 1, 64>}, {pipeline_mode = #tpu.pipeline_mode<synchronous>, transform_indices = @transform_3, window_bounds = array<i64: 64, 128>}, {pipeline_mode = #tpu.pipeline_mode<synchronous>, transform_indices = @transform_4, window_bounds = array<i64: 1, 128>}, {transform_indices = @transform_5, window_bounds = array<i64: 104, 128>}]} {
    %c0 = arith.constant 0 : index
    %c0_0 = arith.constant 0 : index
    %0 = vector.load %arg1[%c0, %c0_0] : memref<832x32xbf16, #tpu.memory_space<vmem>>, vector<832x32xbf16>
    %c0_1 = arith.constant 0 : index
    %c0_2 = arith.constant 0 : index
    %1 = vector.load %arg2[%c0_1, %c0_2] : memref<32x64xbf16, #tpu.memory_space<vmem>>, vector<32x64xbf16>
    %c0_3 = arith.constant 0 : index
    %c0_4 = arith.constant 0 : index
    %2 = vector.load %arg3[%c0_3, %c0_4] : memref<1x64xf32, #tpu.memory_space<vmem>>, vector<1x64xf32>
    %cst = arith.constant dense<0.000000e+00> : vector<832x64xf32>
    %3 = tpu.matmul %0, %1, %cst {dimension_numbers = #tpu.dot_dimension_numbers<[1], [0], [0], [1], [0, 0, 1, 1], [], []>} : vector<832x32xbf16>, vector<32x64xbf16>, vector<832x64xf32> -> vector<832x64xf32>
    %4 = vector.broadcast %2 : vector<1x64xf32> to vector<832x64xf32>
    %5 = arith.addf %3, %4 : vector<832x64xf32>
    %cst_5 = arith.constant 0.000000e+00 : f32
    %6 = vector.broadcast %cst_5 : f32 to vector<832x64xf32>
    %7 = arith.maximumf %5, %6 : vector<832x64xf32>
    %8 = arith.truncf %7 : vector<832x64xf32> to vector<832x64xbf16>
    %c0_6 = arith.constant 0 : index
    %c0_7 = arith.constant 0 : index
    %9 = vector.load %arg4[%c0_6, %c0_7] : memref<64x128xbf16, #tpu.memory_space<vmem>>, vector<64x128xbf16>
    %c0_8 = arith.constant 0 : index
    %c0_9 = arith.constant 0 : index
    %10 = vector.load %arg5[%c0_8, %c0_9] : memref<1x128xf32, #tpu.memory_space<vmem>>, vector<1x128xf32>
    %cst_10 = arith.constant dense<0.000000e+00> : vector<832x128xf32>
    %11 = tpu.matmul %8, %9, %cst_10 {dimension_numbers = #tpu.dot_dimension_numbers<[1], [0], [0], [1], [0, 0, 1, 1], [], []>} : vector<832x64xbf16>, vector<64x128xbf16>, vector<832x128xf32> -> vector<832x128xf32>
    %12 = vector.shape_cast %11 : vector<832x128xf32> to vector<104x8x128xf32>
    %cst_11 = arith.constant dense<0xFF800000> : vector<104x128xf32>
    %13 = vector.multi_reduction <maximumf>, %12, %cst_11 [1] : vector<104x8x128xf32> to vector<104x128xf32>
    %14 = vector.broadcast %10 : vector<1x128xf32> to vector<104x128xf32>
    %15 = arith.addf %13, %14 : vector<104x128xf32>
    %cst_12 = arith.constant 0.000000e+00 : f32
    %16 = vector.broadcast %cst_12 : f32 to vector<104x128xf32>
    %17 = arith.maximumf %15, %16 : vector<104x128xf32>
    %c0_13 = arith.constant 0 : index
    %c0_14 = arith.constant 0 : index
    %18 = vector.load %arg6[%c0_13, %c0_14] : memref<104x128xf32, #tpu.memory_space<vmem>>, vector<104x128xf32>
    tpu.vector_store %arg6[%c0_13, %c0_14], %17 {strides = array<i32>} : memref<104x128xf32, #tpu.memory_space<vmem>>, vector<104x128xf32>,
    return
  }
  func.func @transform_0(%arg0: i32) -> (i32, i32) {
    %c0_i32 = arith.constant 0 : i32
    %c0_i32_0 = arith.constant 0 : i32
    return %arg0, %c0_i32 : i32, i32
  }
  func.func @transform_1(%arg0: i32) -> (i32, i32) {
    %c0_i32 = arith.constant 0 : i32
    %c0_i32_0 = arith.constant 0 : i32
    %c0_i32_1 = arith.constant 0 : i32
    return %c0_i32, %c0_i32_0 : i32, i32
  }
  func.func @transform_2(%arg0: i32) -> (i32, i32) {
    %c0_i32 = arith.constant 0 : i32
    %c0_i32_0 = arith.constant 0 : i32
    %c0_i32_1 = arith.constant 0 : i32
    return %c0_i32, %c0_i32_0 : i32, i32
  }
  func.func @transform_3(%arg0: i32) -> (i32, i32) {
    %c0_i32 = arith.constant 0 : i32
    %c0_i32_0 = arith.constant 0 : i32
    %c0_i32_1 = arith.constant 0 : i32
    return %c0_i32, %c0_i32_0 : i32, i32
  }
  func.func @transform_4(%arg0: i32) -> (i32, i32) {
    %c0_i32 = arith.constant 0 : i32
    %c0_i32_0 = arith.constant 0 : i32
    %c0_i32_1 = arith.constant 0 : i32
    return %c0_i32, %c0_i32_0 : i32, i32
  }
  func.func @transform_5(%arg0: i32) -> (i32, i32) {
    %c0_i32 = arith.constant 0 : i32
    %c0_i32_0 = arith.constant 0 : i32
    return %arg0, %c0_i32 : i32, i32
  }
}

</mosaic_0001>

<bundles_post_ra>
// kernel: tpu_custom_call.1
= control target key start
LH: loop header
LB: loop body
LE: loop exit
PB: predicated region body
PF: predicated region fallthrough
CT: control target
= control target key end

     0   :  { %vm409_vm0 = vcmask 261120   ;;  %s4580_s0 = inlined_call_operand.vmem [shape: bf16[832,32], index: 0, kind: input, shape index: {}]   ;;  %s4581_s1 = inlined_call_operand.vmem [shape: bf16[32,64], index: 1, kind: input, shape index: {}]   ;;  %s4582_s2 = inlined_call_operand.vmem [shape: f32[1,64], index: 2, kind: input, shape index: {}]   ;;  %s4583_s3 = inlined_call_operand.vmem [shape: bf16[64,128], index: 3, kind: input, shape index: {}]   ;;  %s4584_s4 = inlined_call_operand.vmem [shape: f32[1,128], index: 4, kind: input, shape index: {}]   ;;  %s4585_s5 = inlined_call_operand.hbm [shape: f32[104,128], index: 5, kind: output, shape index: {}]  }
   0x1   :  { %v3480_v0 = vld [vmem:[%s4581_s1] sm:$0xff]   ;;  %v3481_v1 = vld [vmem:[%s4581_s1 + $0x8] sm:$0xff]   ;;  %v3484_v4 = vld [vmem:[%s4580_s0 + $0x10] sm:$0xff]  }
   0x2   :  { %3257 = vmatprep.subr.bf16.mxu0 %v3480_v0  ;;  %v3482_v2 = vld [vmem:[%s4580_s0] sm:$0xff]   ;;  %v3483_v3 = vld [vmem:[%s4580_s0 + $0x8] sm:$0xff]   ;;  %v3485_v5 = vld [vmem:[%s4580_s0 + $0x18] sm:$0xff]  }
   0x3   :  { %3258 = vmatpush3.bf16.msra.mxu0 %v3480_v0  ;;  %3261 = vmatprep.mubr.msk.bf16.mxu0 %vm409_vm0, %v3482_v2  ;;  %v3486_v6 = vld [vmem:[%s4580_s0 + $0x20] sm:$0xff]   ;;  %v3487_v7 = vld [vmem:[%s4580_s0 + $0x28] sm:$0xff]   ;;  %v3488_v8 = vld [vmem:[%s4580_s0 + $0x30] sm:$0xff]  }
   0x4   :  { %3259 = vmatprep.subr.bf16.mxu0 %v3481_v1  ;;  %v3489_v9 = vld [vmem:[%s4580_s0 + $0x38] sm:$0xff]   ;;  %v3490_v10 = vld [vmem:[%s4580_s0 + $0x40] sm:$0xff]   ;;  %v3491_v11 = vld [vmem:[%s4580_s0 + $0x48] sm:$0xff]  }
   0x5   :  { %v3492_v12 = vld [vmem:[%s4580_s0 + $0x50] sm:$0xff]   ;;  %v3493_v13 = vld [vmem:[%s4580_s0 + $0x58] sm:$0xff]   ;;  %v3494_v14 = vld [vmem:[%s4580_s0 + $0x60] sm:$0xff]  }
   0x6   :  { %v3495_v15 = vld [vmem:[%s4580_s0 + $0x68] sm:$0xff]  }
   0x7   :  { %3260 = vmatpush3.bf16.msra.mxu0 %v3481_v1 }
   0xa   :  { %3262 = vmatmul.mubr.msk.bf16.vlgmr.msra.gmra.mrb[0].mxu0 %vm409_vm0, %v3483_v3 }
   0xb   :  { %3265 = vmatprep.mubr.msk.bf16.mxu0 %vm409_vm0, %v3484_v4 }
  0x12   :  { %3266 = vmatmul.mubr.msk.bf16.gmra.mrb[4].mxu0 %vm409_vm0, %v3485_v5 }
  0x13   :  { %3269 = vmatprep.mubr.msk.bf16.mxu0 %vm409_vm0, %v3486_v6 }
  0x1a   :  { %3270 = vmatmul.mubr.msk.bf16.gmra.mrb[8].mxu0 %vm409_vm0, %v3487_v7 }
  0x1b   :  { %3273 = vmatprep.mubr.msk.bf16.mxu0 %vm409_vm0, %v3488_v8 }
  0x22   :  { %3274 = vmatmul.mubr.msk.bf16.gmra.mrb[12].mxu0 %vm409_vm0, %v3489_v9 }
  0x23   :  { %3277 = vmatprep.mubr.msk.bf16.mxu0 %vm409_vm0, %v3490_v10 }
  0x2a   :  { %3278 = vmatmul.mubr.msk.bf16.gmra.mrb[16].mxu0 %vm409_vm0, %v3491_v11 }
  0x2b   :  { %3281 = vmatprep.mubr.msk.bf16.mxu0 %vm409_vm0, %v3492_v12 }
  0x32   :  { %3282 = vmatmul.mubr.msk.bf16.gmra.mrb[20].mxu0 %vm409_vm0, %v3493_v13 }
  0x33   :  { %3285 = vmatprep.mubr.msk.bf16.mxu0 %vm409_vm0, %v3494_v14 }
  0x34   :  { %10 = vsyncpa [#allocation3], 0  ;;  %v3496_v16 = vld [vmem:[%s4580_s0 + $0x70] sm:$0xff]   ;;  %v3497_v17 = vld [vmem:[%s4580_s0 + $0x78] sm:$0xff]   ;;  %vm1204_vm1 = vcmask 523264   ;;  %vm2753_vm2 = vcmask 1041409  }
  0x35   :  { %v3498_v18 = vld [vmem:[%s4580_s0 + $0x80] sm:$0xff]   ;;  %v3499_v19 = vld [vmem:[%s4580_s0 + $0x88] sm:$0xff]   ;;  %v3500_v20 = vld [vmem:[%s4580_s0 + $0x90] sm:$0xff]   ;;  %vm2756_vm3 = vcmask 1042434   ;;  %vm2759_vm4 = vcmask 1043459   ;;  %vm2762_vm5 = vcmask 1044484  }
  0x36   :  { %v3501_v21 = vld [vmem:[%s4580_s0 + $0x98] sm:$0xff]   ;;  %v3502_v22 = vld [vmem:[%s4580_s0 + $0xa0] sm:$0xff]   ;;  %v3535_v24 = vld [vmem:[%s4583_s3 + $0x8] sm:$0xff]   ;;  %vm2765_vm6 = vcmask 1045509   ;;  %vm2768_vm7 = vcmask 1046534   ;;  %vm2771_vm8 = vcmask 1047559  }
  0x37   :  { %v3534_v23 = vld [vmem:[%s4583_s3] sm:$0xff]   ;;  %v3503_v25 = vld [vmem:[%s4580_s0 + $0xa8] sm:$0xff]   ;;  %v3504_v26 = vld [vmem:[%s4580_s0 + $0xb0] sm:$0xff]  }
  0x38   :  { %3365 = vmatprep.subr.bf16.mxu1 %v3534_v23  ;;  %v3505_v27 = vld [vmem:[%s4580_s0 + $0xb8] sm:$0xff]   ;;  %v3536_v28 = vld [vmem:[%s4583_s3 + $0x10] sm:$0xff]   ;;  %v3506_v29 = vld [vmem:[%s4580_s0 + $0xc0] sm:$0xff]  }
  0x39   :  { %3366 = vmatpush3.bf16.msra.mxu1 %v3534_v23  ;;  %v3537_v30 = vld [vmem:[%s4583_s3 + $0x18] sm:$0xff]   ;;  %v3507_v31 = vld [vmem:[%s4580_s0 + $0xc8] sm:$0xff]   ;;  %v3508_v32 = vld [vmem:[%s4580_s0 + $0xd0] sm:$0xff]  }
  0x3a   :  { %3286 = vmatmul.mubr.msk.bf16.gmra.mrb[24].mxu0 %vm409_vm0, %v3495_v15  ;;  %3367 = vmatprep.subr.bf16.mxu1 %v3535_v24  ;;  %v3509_v33 = vld [vmem:[%s4580_s0 + $0xd8] sm:$0xff]   ;;  %v3510_v34 = vld [vmem:[%s4580_s0 + $0xe0] sm:$0xff]   ;;  %v3511_v35 = vld [vmem:[%s4580_s0 + $0xe8] sm:$0xff]  }
  0x3b   :  { %3289 = vmatprep.mubr.msk.bf16.mxu0 %vm409_vm0, %v3496_v16  ;;  %v3512_v36 = vld [vmem:[%s4580_s0 + $0xf0] sm:$0xff]   ;;  %v3513_v37 = vld [vmem:[%s4580_s0 + $0xf8] sm:$0xff]   ;;  %v3514_v38 = vld [vmem:[%s4580_s0 + $0x100] sm:$0xff]  }
  0x3c   :  { %v3515_v39 = vld [vmem:[%s4580_s0 + $0x108] sm:$0xff]   ;;  %v3516_v40 = vld [vmem:[%s4580_s0 + $0x110] sm:$0xff]   ;;  %v3517_v41 = vld [vmem:[%s4580_s0 + $0x118] sm:$0xff]  }
  0x3d   :  { %3368 = vmatpush3.bf16.msra.mxu1 %v3535_v24  ;;  %v3518_v42 = vld [vmem:[%s4580_s0 + $0x120] sm:$0xff]   ;;  %v3519_v43 = vld [vmem:[%s4580_s0 + $0x128] sm:$0xff]   ;;  %v3520_v44 = vld [vmem:[%s4580_s0 + $0x130] sm:$0xff]  }
  0x3e   :  { %3369 = vmatprep.subr.bf16.mxu1 %v3536_v28  ;;  %v3521_v45 = vld [vmem:[%s4580_s0 + $0x138] sm:$0xff]   ;;  %v3522_v46 = vld [vmem:[%s4580_s0 + $0x140] sm:$0xff]   ;;  %v3523_v47 = vld [vmem:[%s4580_s0 + $0x148] sm:$0xff]  }
  0x3f   :  { %v3524_v48 = vld [vmem:[%s4580_s0 + $0x150] sm:$0xff]   ;;  %v3525_v49 = vld [vmem:[%s4580_s0 + $0x158] sm:$0xff]   ;;  %v3526_v50 = vld [vmem:[%s4580_s0 + $0x160] sm:$0xff]  }
  0x40   :  { %v3527_v51 = vld [vmem:[%s4580_s0 + $0x168] sm:$0xff]   ;;  %v3528_v52 = vld [vmem:[%s4580_s0 + $0x170] sm:$0xff]   ;;  %v3529_v53 = vld [vmem:[%s4580_s0 + $0x178] sm:$0xff]  }
  0x41   :  { %3370 = vmatpush3.bf16.msra.mxu1 %v3536_v28  ;;  %v3530_v54 = vld [vmem:[%s4580_s0 + $0x180] sm:$0xff]   ;;  %v3531_v55 = vld [vmem:[%s4580_s0 + $0x188] sm:$0xff]   ;;  %v3532_v56 = vld [vmem:[%s4580_s0 + $0x190] sm:$0xff]  }
  0x42   :  { %3290 = vmatmul.mubr.msk.bf16.gmra.mrb[28].mxu0 %vm409_vm0, %v3497_v17  ;;  %3371 = vmatprep.subr.bf16.mxu1 %v3537_v30  ;;  %v3533_v57 = vld [vmem:[%s4580_s0 + $0x198] sm:$0xff]   ;;  %v3826_v58 = vld [vmem:[%s4582_s2] ss:$0 sm:$0xff] }
  0x43   :  { %3293 = vmatprep.mubr.msk.bf16.mxu0 %vm409_vm0, %v3498_v18 }
  0x45   :  { %3372 = vmatpush3.bf16.msra.mxu1 %v3537_v30 }
  0x4a   :  { %3294 = vmatmul.mubr.msk.bf16.gmra.mrb[32].mxu0 %vm409_vm0, %v3499_v19 }
  0x4b   :  { %3297 = vmatprep.mubr.msk.bf16.mxu0 %vm409_vm0, %v3500_v20 }
  0x52   :  { %3298 = vmatmul.mubr.msk.bf16.gmra.mrb[36].mxu0 %vm409_vm0, %v3501_v21 }
  0x53   :  { %3301 = vmatprep.mubr.msk.bf16.mxu0 %vm409_vm0, %v3502_v22 }
  0x5a   :  { %3302 = vmatmul.mubr.msk.bf16.gmra.mrb[40].mxu0 %vm409_vm0, %v3503_v25 }
  0x5b   :  { %3305 = vmatprep.mubr.msk.bf16.mxu0 %vm409_vm0, %v3504_v26 }
  0x62   :  { %3306 = vmatmul.mubr.msk.bf16.gmra.mrb[44].mxu0 %vm409_vm0, %v3505_v27 }
  0x63   :  { %3309 = vmatprep.mubr.msk.bf16.mxu0 %vm409_vm0, %v3506_v29 }
  0x6a   :  { %3310 = vmatmul.mubr.msk.bf16.gmra.mrb[48].mxu0 %vm409_vm0, %v3507_v31 }
  0x6b   :  { %3313 = vmatprep.mubr.msk.bf16.mxu0 %vm409_vm0, %v3508_v32 }
  0x72   :  { %3314 = vmatmul.mubr.msk.bf16.gmra.mrb[52].mxu0 %vm409_vm0, %v3509_v33 }
  0x73   :  { %3317 = vmatprep.mubr.msk.bf16.mxu0 %vm409_vm0, %v3510_v34 }
  0x7a   :  { %3318 = vmatmul.mubr.msk.bf16.gmra.mrb[56].mxu0 %vm409_vm0, %v3511_v35 }
  0x7b   :  { %3321 = vmatprep.mubr.msk.bf16.mxu0 %vm409_vm0, %v3512_v36 }
  0x82   :  { %3322 = vmatmul.mubr.msk.bf16.gmra.mrb[60].mxu0 %vm409_vm0, %v3513_v37 }
  0x83   :  { %3325 = vmatprep.mubr.msk.bf16.mxu0 %vm409_vm0, %v3514_v38 }
  0x8a   :  { %3326 = vmatmul.mubr.msk.bf16.gmra.mrb[64].mxu0 %vm409_vm0, %v3515_v39 }
  0x8b   :  { %3329 = vmatprep.mubr.msk.bf16.mxu0 %vm409_vm0, %v3516_v40 }
  0x92   :  { %3330 = vmatmul.mubr.msk.bf16.gmra.mrb[68].mxu0 %vm409_vm0, %v3517_v41 }
  0x93   :  { %3333 = vmatprep.mubr.msk.bf16.mxu0 %vm409_vm0, %v3518_v42 }
  0x9a   :  { %3334 = vmatmul.mubr.msk.bf16.gmra.mrb[72].mxu0 %vm409_vm0, %v3519_v43 }
  0x9b   :  { %3337 = vmatprep.mubr.msk.bf16.mxu0 %vm409_vm0, %v3520_v44 }
  0xa2   :  { %3338 = vmatmul.mubr.msk.bf16.gmra.mrb[76].mxu0 %vm409_vm0, %v3521_v45 }
  0xa3   :  { %3341 = vmatprep.mubr.msk.bf16.mxu0 %vm409_vm0, %v3522_v46 }
  0xaa   :  { %3342 = vmatmul.mubr.msk.bf16.gmra.mrb[80].mxu0 %vm409_vm0, %v3523_v47 }
  0xab   :  { %3345 = vmatprep.mubr.msk.bf16.mxu0 %vm409_vm0, %v3524_v48 }
  0xb2   :  { %3346 = vmatmul.mubr.msk.bf16.gmra.mrb[84].mxu0 %vm409_vm0, %v3525_v49 }
  0xb3   :  { %3349 = vmatprep.mubr.msk.bf16.mxu0 %vm409_vm0, %v3526_v50 }
  0xba   :  { %3350 = vmatmul.mubr.msk.bf16.gmra.mrb[88].mxu0 %vm409_vm0, %v3527_v51 }
  0xbb   :  { %3353 = vmatprep.mubr.msk.bf16.mxu0 %vm409_vm0, %v3528_v52 }
  0xc2   :  { %3354 = vmatmul.mubr.msk.bf16.gmra.mrb[92].mxu0 %vm409_vm0, %v3529_v53 }
  0xc3   :  { %3357 = vmatprep.mubr.msk.bf16.mxu0 %vm409_vm0, %v3530_v54 }
  0xca   :  { %3358 = vmatmul.mubr.msk.bf16.gmra.mrb[96].mxu0 %vm409_vm0, %v3531_v55 }
  0xcb   :  { %3361 = vmatprep.mubr.msk.bf16.mxu0 %vm409_vm0, %v3532_v56 }
  0xd2   :  { %3362 = vmatmul.mubr.msk.bf16.gmra.mrb[100].mxu0 %vm409_vm0, %v3533_v57 }
  0xdd   :  { %v3263_v59 = vpop.f32.mrb[0].mxu0 }
  0xde   :  { %v609_v60 = vadd.f32 %v3263_v59, %v3826_v58  ;;  %v600_v61 = vpop.f32.mrb[1].mxu0 }
  0xdf   :  { %v601_v62 = vadd.f32 %v3826_v58, %v600_v61  ;;  %v3264_v63 = vpop.f32.mrb[2].mxu0 }
  0xe0   :  { %v612_v0 = vadd.f32 %v3264_v63, %v3826_v58  ;;  %v603_v1 = vpop.f32.mrb[3].mxu0  ;;  %v1017_v3 = vmax.f32 %v609_v60, 0.0 }
  0xe1   :  { %v604_v2 = vadd.f32 %v3826_v58, %v603_v1  ;;  %v1015_v5 = vmax.f32 %v601_v62, 0.0 }
  0xe2   :  { %v1018_v4 = vmax.f32 %v612_v0, 0.0 }
  0xe3   :  { %v1016_v6 = vmax.f32 %v604_v2, 0.0 }
  0xe4   :  { %v1120_v7 = vpack.c.bf16 %v1018_v4, %v1017_v3 }
  0xe5   :  { %v3267_v8 = vpop.f32.mrb[4].mxu0  ;;  %v1119_v9 = vpack.c.bf16 %v1016_v6, %v1015_v5 }
  0xe6   :  { %v625_v10 = vadd.f32 %v3267_v8, %v3826_v58  ;;  %v616_v11 = vpop.f32.mrb[5].mxu0 }
  0xe7   :  { %v617_v12 = vadd.f32 %v3826_v58, %v616_v11  ;;  %v3268_v13 = vpop.f32.mrb[6].mxu0  ;;  %3373 = vmatprep.mubr.msk.bf16.mxu1 %vm1204_vm1, %v1119_v9 }
  0xe8   :  { %v628_v14 = vadd.f32 %v3268_v13, %v3826_v58  ;;  %v619_v15 = vpop.f32.mrb[7].mxu0  ;;  %3374 = vmatmul.mubr.msk.bf16.vlgmr.msra.gmra.mrb[0].mxu1 %vm1204_vm1, %v1120_v7  ;;  %v1021_v17 = vmax.f32 %v625_v10, 0.0 }
  0xe9   :  { %v620_v16 = vadd.f32 %v3826_v58, %v619_v15  ;;  %v1019_v19 = vmax.f32 %v617_v12, 0.0 }
  0xea   :  { %v1022_v18 = vmax.f32 %v628_v14, 0.0 }
  0xeb   :  { %v1020_v20 = vmax.f32 %v620_v16, 0.0 }
  0xec   :  { %v1122_v21 = vpack.c.bf16 %v1022_v18, %v1021_v17 }
  0xed   :  { %v1121_v22 = vpack.c.bf16 %v1020_v20, %v1019_v19  ;;  %v3271_v23 = vpop.f32.mrb[8].mxu0 }
  0xee   :  { %v641_v24 = vadd.f32 %v3271_v23, %v3826_v58  ;;  %v632_v25 = vpop.f32.mrb[9].mxu0 }
  0xef   :  { %v633_v26 = vadd.f32 %v3826_v58, %v632_v25  ;;  %v3272_v27 = vpop.f32.mrb[10].mxu0  ;;  %3377 = vmatprep.mubr.msk.bf16.mxu1 %vm1204_vm1, %v1121_v22 }
  0xf0   :  { %v644_v28 = vadd.f32 %v3272_v27, %v3826_v58  ;;  %v635_v29 = vpop.f32.mrb[11].mxu0  ;;  %3378 = vmatmul.mubr.msk.bf16.gmra.mrb[4].mxu1 %vm1204_vm1, %v1122_v21  ;;  %v1025_v31 = vmax.f32 %v641_v24, 0.0 }
  0xf1   :  { %v636_v30 = vadd.f32 %v3826_v58, %v635_v29  ;;  %v1023_v33 = vmax.f32 %v633_v26, 0.0 }
  0xf2   :  { %v1026_v32 = vmax.f32 %v644_v28, 0.0 }
  0xf3   :  { %v1024_v34 = vmax.f32 %v636_v30, 0.0 }
  0xf4   :  { %v1124_v35 = vpack.c.bf16 %v1026_v32, %v1025_v31 }
  0xf5   :  { %v1123_v36 = vpack.c.bf16 %v1024_v34, %v1023_v33  ;;  %v3275_v37 = vpop.f32.mrb[12].mxu0 }
  0xf6   :  { %v657_v38 = vadd.f32 %v3275_v37, %v3826_v58  ;;  %v648_v39 = vpop.f32.mrb[13].mxu0 }
  0xf7   :  { %v649_v40 = vadd.f32 %v3826_v58, %v648_v39  ;;  %v3276_v41 = vpop.f32.mrb[14].mxu0  ;;  %3381 = vmatprep.mubr.msk.bf16.mxu1 %vm1204_vm1, %v1123_v36 }
  0xf8   :  { %v660_v42 = vadd.f32 %v3276_v41, %v3826_v58  ;;  %v651_v43 = vpop.f32.mrb[15].mxu0  ;;  %3382 = vmatmul.mubr.msk.bf16.gmra.mrb[8].mxu1 %vm1204_vm1, %v1124_v35  ;;  %v1029_v45 = vmax.f32 %v657_v38, 0.0 }
  0xf9   :  { %v652_v44 = vadd.f32 %v3826_v58, %v651_v43  ;;  %v1027_v47 = vmax.f32 %v649_v40, 0.0 }
  0xfa   :  { %v1030_v46 = vmax.f32 %v660_v42, 0.0 }
  0xfb   :  { %v1028_v48 = vmax.f32 %v652_v44, 0.0 }
  0xfc   :  { %v1126_v49 = vpack.c.bf16 %v1030_v46, %v1029_v45 }
  0xfd   :  { %v1125_v50 = vpack.c.bf16 %v1028_v48, %v1027_v47  ;;  %v3279_v51 = vpop.f32.mrb[16].mxu0 }
  0xfe   :  { %v673_v52 = vadd.f32 %v3279_v51, %v3826_v58  ;;  %v664_v53 = vpop.f32.mrb[17].mxu0 }
  0xff   :  { %v665_v54 = vadd.f32 %v3826_v58, %v664_v53  ;;  %v3280_v55 = vpop.f32.mrb[18].mxu0  ;;  %3385 = vmatprep.mubr.msk.bf16.mxu1 %vm1204_vm1, %v1125_v50 }
 0x100   :  { %v676_v56 = vadd.f32 %v3280_v55, %v3826_v58  ;;  %v667_v57 = vpop.f32.mrb[19].mxu0  ;;  %3386 = vmatmul.mubr.msk.bf16.gmra.mrb[12].mxu1 %vm1204_vm1, %v1126_v49  ;;  %v1033_v60 = vmax.f32 %v673_v52, 0.0 }
 0x101   :  { %v668_v59 = vadd.f32 %v3826_v58, %v667_v57  ;;  %v1031_v62 = vmax.f32 %v665_v54, 0.0 }
 0x102   :  { %v1034_v61 = vmax.f32 %v676_v56, 0.0 }
 0x103   :  { %v1032_v63 = vmax.f32 %v668_v59, 0.0 }
 0x104   :  { %v1128_v0 = vpack.c.bf16 %v1034_v61, %v1033_v60 }
 0x105   :  { %v1127_v1 = vpack.c.bf16 %v1032_v63, %v1031_v62  ;;  %v3283_v2 = vpop.f32.mrb[20].mxu0 }
 0x106   :  { %v689_v3 = vadd.f32 %v3283_v2, %v3826_v58  ;;  %v680_v4 = vpop.f32.mrb[21].mxu0 }
 0x107   :  { %v681_v5 = vadd.f32 %v3826_v58, %v680_v4  ;;  %v3284_v6 = vpop.f32.mrb[22].mxu0  ;;  %3389 = vmatprep.mubr.msk.bf16.mxu1 %vm1204_vm1, %v1127_v1 }
 0x108   :  { %v692_v7 = vadd.f32 %v3284_v6, %v3826_v58  ;;  %v683_v8 = vpop.f32.mrb[23].mxu0  ;;  %3390 = vmatmul.mubr.msk.bf16.gmra.mrb[16].mxu1 %vm1204_vm1, %v1128_v0  ;;  %v1037_v10 = vmax.f32 %v689_v3, 0.0 }
 0x109   :  { %v684_v9 = vadd.f32 %v3826_v58, %v683_v8  ;;  %v1035_v12 = vmax.f32 %v681_v5, 0.0 }
 0x10a   :  { %v1038_v11 = vmax.f32 %v692_v7, 0.0 }
 0x10b   :  { %v1036_v13 = vmax.f32 %v684_v9, 0.0 }
 0x10c   :  { %v1130_v14 = vpack.c.bf16 %v1038_v11, %v1037_v10 }
 0x10d   :  { %v1129_v15 = vpack.c.bf16 %v1036_v13, %v1035_v12  ;;  %v3287_v16 = vpop.f32.mrb[24].mxu0 }
 0x10e   :  { %v705_v17 = vadd.f32 %v3287_v16, %v3826_v58  ;;  %v696_v18 = vpop.f32.mrb[25].mxu0 }
 0x10f   :  { %v697_v19 = vadd.f32 %v3826_v58, %v696_v18  ;;  %v3288_v20 = vpop.f32.mrb[26].mxu0  ;;  %3393 = vmatprep.mubr.msk.bf16.mxu1 %vm1204_vm1, %v1129_v15 }
 0x110   :  { %v708_v21 = vadd.f32 %v3288_v20, %v3826_v58  ;;  %v699_v22 = vpop.f32.mrb[27].mxu0  ;;  %3394 = vmatmul.mubr.msk.bf16.gmra.mrb[20].mxu1 %vm1204_vm1, %v1130_v14  ;;  %v1041_v24 = vmax.f32 %v705_v17, 0.0 }
 0x111   :  { %v700_v23 = vadd.f32 %v3826_v58, %v699_v22  ;;  %v1039_v26 = vmax.f32 %v697_v19, 0.0 }
 0x112   :  { %v1042_v25 = vmax.f32 %v708_v21, 0.0 }
 0x113   :  { %v1040_v27 = vmax.f32 %v700_v23, 0.0 }
 0x114   :  { %v1132_v28 = vpack.c.bf16 %v1042_v25, %v1041_v24 }
 0x115   :  { %v1131_v29 = vpack.c.bf16 %v1040_v27, %v1039_v26  ;;  %v3291_v30 = vpop.f32.mrb[28].mxu0 }
 0x116   :  { %v721_v31 = vadd.f32 %v3291_v30, %v3826_v58  ;;  %v712_v32 = vpop.f32.mrb[29].mxu0 }
 0x117   :  { %v713_v33 = vadd.f32 %v3826_v58, %v712_v32  ;;  %v3292_v34 = vpop.f32.mrb[30].mxu0  ;;  %3397 = vmatprep.mubr.msk.bf16.mxu1 %vm1204_vm1, %v1131_v29 }
 0x118   :  { %v724_v35 = vadd.f32 %v3292_v34, %v3826_v58  ;;  %v715_v36 = vpop.f32.mrb[31].mxu0  ;;  %3398 = vmatmul.mubr.msk.bf16.gmra.mrb[24].mxu1 %vm1204_vm1, %v1132_v28  ;;  %v1045_v38 = vmax.f32 %v721_v31, 0.0 }
 0x119   :  { %v716_v37 = vadd.f32 %v3826_v58, %v715_v36  ;;  %v1043_v40 = vmax.f32 %v713_v33, 0.0 }
 0x11a   :  { %v1046_v39 = vmax.f32 %v724_v35, 0.0 }
 0x11b   :  { %v1044_v41 = vmax.f32 %v716_v37, 0.0 }
 0x11c   :  { %v1134_v42 = vpack.c.bf16 %v1046_v39, %v1045_v38 }
 0x11d   :  { %v1133_v43 = vpack.c.bf16 %v1044_v41, %v1043_v40  ;;  %v3295_v44 = vpop.f32.mrb[32].mxu0 }
 0x11e   :  { %v737_v45 = vadd.f32 %v3295_v44, %v3826_v58  ;;  %v728_v46 = vpop.f32.mrb[33].mxu0 }
 0x11f   :  { %v729_v47 = vadd.f32 %v3826_v58, %v728_v46  ;;  %v3296_v48 = vpop.f32.mrb[34].mxu0  ;;  %3401 = vmatprep.mubr.msk.bf16.mxu1 %vm1204_vm1, %v1133_v43 }
 0x120   :  { %v740_v49 = vadd.f32 %v3296_v48, %v3826_v58  ;;  %v731_v50 = vpop.f32.mrb[35].mxu0  ;;  %3402 = vmatmul.mubr.msk.bf16.gmra.mrb[28].mxu1 %vm1204_vm1, %v1134_v42  ;;  %v1049_v52 = vmax.f32 %v737_v45, 0.0 }
 0x121   :  { %v732_v51 = vadd.f32 %v3826_v58, %v731_v50  ;;  %v1047_v54 = vmax.f32 %v729_v47, 0.0 }
 0x122   :  { %v1050_v53 = vmax.f32 %v740_v49, 0.0 }
 0x123   :  { %v1048_v55 = vmax.f32 %v732_v51, 0.0 }
 0x124   :  { %v1136_v56 = vpack.c.bf16 %v1050_v53, %v1049_v52 }
 0x125   :  { %v1135_v57 = vpack.c.bf16 %v1048_v55, %v1047_v54  ;;  %v3299_v59 = vpop.f32.mrb[36].mxu0 }
 0x126   :  { %v753_v60 = vadd.f32 %v3299_v59, %v3826_v58  ;;  %v744_v61 = vpop.f32.mrb[37].mxu0 }
 0x127   :  { %v745_v62 = vadd.f32 %v3826_v58, %v744_v61  ;;  %v3300_v63 = vpop.f32.mrb[38].mxu0  ;;  %3405 = vmatprep.mubr.msk.bf16.mxu1 %vm1204_vm1, %v1135_v57 }
 0x128   :  { %v756_v0 = vadd.f32 %v3300_v63, %v3826_v58  ;;  %v747_v1 = vpop.f32.mrb[39].mxu0  ;;  %3406 = vmatmul.mubr.msk.bf16.gmra.mrb[32].mxu1 %vm1204_vm1, %v1136_v56  ;;  %v1053_v3 = vmax.f32 %v753_v60, 0.0 }
 0x129   :  { %v748_v2 = vadd.f32 %v3826_v58, %v747_v1  ;;  %v1051_v5 = vmax.f32 %v745_v62, 0.0 }
 0x12a   :  { %v1054_v4 = vmax.f32 %v756_v0, 0.0 }
 0x12b   :  { %v1052_v6 = vmax.f32 %v748_v2, 0.0 }
 0x12c   :  { %v1138_v7 = vpack.c.bf16 %v1054_v4, %v1053_v3 }
 0x12d   :  { %v1137_v8 = vpack.c.bf16 %v1052_v6, %v1051_v5  ;;  %v3303_v9 = vpop.f32.mrb[40].mxu0 }
 0x12e   :  { %v769_v10 = vadd.f32 %v3303_v9, %v3826_v58  ;;  %v760_v11 = vpop.f32.mrb[41].mxu0 }
 0x12f   :  { %v761_v12 = vadd.f32 %v3826_v58, %v760_v11  ;;  %v3304_v13 = vpop.f32.mrb[42].mxu0  ;;  %3409 = vmatprep.mubr.msk.bf16.mxu1 %vm1204_vm1, %v1137_v8 }
 0x130   :  { %v772_v14 = vadd.f32 %v3304_v13, %v3826_v58  ;;  %v763_v15 = vpop.f32.mrb[43].mxu0  ;;  %3410 = vmatmul.mubr.msk.bf16.gmra.mrb[36].mxu1 %vm1204_vm1, %v1138_v7  ;;  %v1057_v17 = vmax.f32 %v769_v10, 0.0 }
 0x131   :  { %v764_v16 = vadd.f32 %v3826_v58, %v763_v15  ;;  %v1055_v19 = vmax.f32 %v761_v12, 0.0 }
 0x132   :  { %v1058_v18 = vmax.f32 %v772_v14, 0.0 }
 0x133   :  { %v1056_v20 = vmax.f32 %v764_v16, 0.0 }
 0x134   :  { %v1140_v21 = vpack.c.bf16 %v1058_v18, %v1057_v17 }
 0x135   :  { %v1139_v22 = vpack.c.bf16 %v1056_v20, %v1055_v19  ;;  %v3307_v23 = vpop.f32.mrb[44].mxu0 }
 0x136   :  { %v785_v24 = vadd.f32 %v3307_v23, %v3826_v58  ;;  %v776_v25 = vpop.f32.mrb[45].mxu0 }
 0x137   :  { %v777_v26 = vadd.f32 %v3826_v58, %v776_v25  ;;  %v3308_v27 = vpop.f32.mrb[46].mxu0  ;;  %3413 = vmatprep.mubr.msk.bf16.mxu1 %vm1204_vm1, %v1139_v22 }
 0x138   :  { %v788_v28 = vadd.f32 %v3308_v27, %v3826_v58  ;;  %v779_v29 = vpop.f32.mrb[47].mxu0  ;;  %3414 = vmatmul.mubr.msk.bf16.gmra.mrb[40].mxu1 %vm1204_vm1, %v1140_v21  ;;  %v1061_v31 = vmax.f32 %v785_v24, 0.0 }
 0x139   :  { %v780_v30 = vadd.f32 %v3826_v58, %v779_v29  ;;  %v1059_v33 = vmax.f32 %v777_v26, 0.0 }
 0x13a   :  { %v1062_v32 = vmax.f32 %v788_v28, 0.0 }
 0x13b   :  { %v1060_v34 = vmax.f32 %v780_v30, 0.0 }
 0x13c   :  { %v1142_v35 = vpack.c.bf16 %v1062_v32, %v1061_v31 }
 0x13d   :  { %v1141_v36 = vpack.c.bf16 %v1060_v34, %v1059_v33  ;;  %v3311_v37 = vpop.f32.mrb[48].mxu0 }
 0x13e   :  { %v801_v38 = vadd.f32 %v3311_v37, %v3826_v58  ;;  %v792_v39 = vpop.f32.mrb[49].mxu0 }
 0x13f   :  { %v793_v40 = vadd.f32 %v3826_v58, %v792_v39  ;;  %v3312_v41 = vpop.f32.mrb[50].mxu0  ;;  %3417 = vmatprep.mubr.msk.bf16.mxu1 %vm1204_vm1, %v1141_v36 }
 0x140   :  { %v804_v42 = vadd.f32 %v3312_v41, %v3826_v58  ;;  %v795_v43 = vpop.f32.mrb[51].mxu0  ;;  %3418 = vmatmul.mubr.msk.bf16.gmra.mrb[44].mxu1 %vm1204_vm1, %v1142_v35  ;;  %v1065_v45 = vmax.f32 %v801_v38, 0.0 }
 0x141   :  { %v796_v44 = vadd.f32 %v3826_v58, %v795_v43  ;;  %v1063_v47 = vmax.f32 %v793_v40, 0.0 }
 0x142   :  { %v1066_v46 = vmax.f32 %v804_v42, 0.0 }
 0x143   :  { %v1064_v48 = vmax.f32 %v796_v44, 0.0 }
 0x144   :  { %v1144_v49 = vpack.c.bf16 %v1066_v46, %v1065_v45 }
 0x145   :  { %v1143_v50 = vpack.c.bf16 %v1064_v48, %v1063_v47  ;;  %v3315_v51 = vpop.f32.mrb[52].mxu0 }
 0x146   :  { %v817_v52 = vadd.f32 %v3315_v51, %v3826_v58  ;;  %v808_v53 = vpop.f32.mrb[53].mxu0 }
 0x147   :  { %v809_v54 = vadd.f32 %v3826_v58, %v808_v53  ;;  %v3316_v55 = vpop.f32.mrb[54].mxu0  ;;  %3421 = vmatprep.mubr.msk.bf16.mxu1 %vm1204_vm1, %v1143_v50 }
 0x148   :  { %v820_v56 = vadd.f32 %v3316_v55, %v3826_v58  ;;  %v811_v57 = vpop.f32.mrb[55].mxu0  ;;  %3422 = vmatmul.mubr.msk.bf16.gmra.mrb[48].mxu1 %vm1204_vm1, %v1144_v49  ;;  %v1069_v60 = vmax.f32 %v817_v52, 0.0 }
 0x149   :  { %v812_v59 = vadd.f32 %v3826_v58, %v811_v57  ;;  %v1067_v62 = vmax.f32 %v809_v54, 0.0 }
 0x14a   :  { %v1070_v61 = vmax.f32 %v820_v56, 0.0 }
 0x14b   :  { %v1068_v63 = vmax.f32 %v812_v59, 0.0 }
 0x14c   :  { %v1146_v0 = vpack.c.bf16 %v1070_v61, %v1069_v60 }
 0x14d   :  { %v1145_v1 = vpack.c.bf16 %v1068_v63, %v1067_v62  ;;  %v3319_v2 = vpop.f32.mrb[56].mxu0 }
 0x14e   :  { %v833_v3 = vadd.f32 %v3319_v2, %v3826_v58  ;;  %v824_v4 = vpop.f32.mrb[57].mxu0 }
 0x14f   :  { %v825_v5 = vadd.f32 %v3826_v58, %v824_v4  ;;  %v3320_v6 = vpop.f32.mrb[58].mxu0  ;;  %3425 = vmatprep.mubr.msk.bf16.mxu1 %vm1204_vm1, %v1145_v1 }
 0x150   :  { %v836_v7 = vadd.f32 %v3320_v6, %v3826_v58  ;;  %v827_v8 = vpop.f32.mrb[59].mxu0  ;;  %3426 = vmatmul.mubr.msk.bf16.gmra.mrb[52].mxu1 %vm1204_vm1, %v1146_v0  ;;  %v1073_v10 = vmax.f32 %v833_v3, 0.0 }
 0x151   :  { %v828_v9 = vadd.f32 %v3826_v58, %v827_v8  ;;  %v1071_v12 = vmax.f32 %v825_v5, 0.0 }
 0x152   :  { %v1074_v11 = vmax.f32 %v836_v7, 0.0 }
 0x153   :  { %v1072_v13 = vmax.f32 %v828_v9, 0.0 }
 0x154   :  { %v1148_v14 = vpack.c.bf16 %v1074_v11, %v1073_v10 }
 0x155   :  { %v1147_v15 = vpack.c.bf16 %v1072_v13, %v1071_v12  ;;  %v3323_v16 = vpop.f32.mrb[60].mxu0 }
 0x156   :  { %v849_v17 = vadd.f32 %v3323_v16, %v3826_v58  ;;  %v840_v18 = vpop.f32.mrb[61].mxu0 }
 0x157   :  { %v841_v19 = vadd.f32 %v3826_v58, %v840_v18  ;;  %v3324_v20 = vpop.f32.mrb[62].mxu0  ;;  %3429 = vmatprep.mubr.msk.bf16.mxu1 %vm1204_vm1, %v1147_v15 }
 0x158   :  { %v852_v21 = vadd.f32 %v3324_v20, %v3826_v58  ;;  %v843_v22 = vpop.f32.mrb[63].mxu0  ;;  %3430 = vmatmul.mubr.msk.bf16.gmra.mrb[56].mxu1 %vm1204_vm1, %v1148_v14  ;;  %v1077_v24 = vmax.f32 %v849_v17, 0.0 }
 0x159   :  { %v844_v23 = vadd.f32 %v3826_v58, %v843_v22  ;;  %v1075_v26 = vmax.f32 %v841_v19, 0.0 }
 0x15a   :  { %v1078_v25 = vmax.f32 %v852_v21, 0.0 }
 0x15b   :  { %v1076_v27 = vmax.f32 %v844_v23, 0.0 }
 0x15c   :  { %v1150_v28 = vpack.c.bf16 %v1078_v25, %v1077_v24 }
 0x15d   :  { %v1149_v29 = vpack.c.bf16 %v1076_v27, %v1075_v26  ;;  %v3327_v30 = vpop.f32.mrb[64].mxu0 }
 0x15e   :  { %v865_v31 = vadd.f32 %v3327_v30, %v3826_v58  ;;  %v856_v32 = vpop.f32.mrb[65].mxu0 }
 0x15f   :  { %v857_v33 = vadd.f32 %v3826_v58, %v856_v32  ;;  %v3328_v34 = vpop.f32.mrb[66].mxu0  ;;  %3433 = vmatprep.mubr.msk.bf16.mxu1 %vm1204_vm1, %v1149_v29 }
 0x160   :  { %v868_v35 = vadd.f32 %v3328_v34, %v3826_v58  ;;  %v859_v36 = vpop.f32.mrb[67].mxu0  ;;  %3434 = vmatmul.mubr.msk.bf16.gmra.mrb[60].mxu1 %vm1204_vm1, %v1150_v28  ;;  %v1081_v38 = vmax.f32 %v865_v31, 0.0 }
 0x161   :  { %v860_v37 = vadd.f32 %v3826_v58, %v859_v36  ;;  %v1079_v40 = vmax.f32 %v857_v33, 0.0 }
 0x162   :  { %v1082_v39 = vmax.f32 %v868_v35, 0.0 }
 0x163   :  { %v1080_v41 = vmax.f32 %v860_v37, 0.0 }
 0x164   :  { %v1152_v42 = vpack.c.bf16 %v1082_v39, %v1081_v38 }
 0x165   :  { %v1151_v43 = vpack.c.bf16 %v1080_v41, %v1079_v40  ;;  %v3331_v44 = vpop.f32.mrb[68].mxu0 }
 0x166   :  { %v881_v45 = vadd.f32 %v3331_v44, %v3826_v58  ;;  %v872_v46 = vpop.f32.mrb[69].mxu0 }
 0x167   :  { %v873_v47 = vadd.f32 %v3826_v58, %v872_v46  ;;  %v3332_v48 = vpop.f32.mrb[70].mxu0  ;;  %3437 = vmatprep.mubr.msk.bf16.mxu1 %vm1204_vm1, %v1151_v43 }
 0x168   :  { %v884_v49 = vadd.f32 %v3332_v48, %v3826_v58  ;;  %v875_v50 = vpop.f32.mrb[71].mxu0  ;;  %3438 = vmatmul.mubr.msk.bf16.gmra.mrb[64].mxu1 %vm1204_vm1, %v1152_v42  ;;  %v1085_v52 = vmax.f32 %v881_v45, 0.0 }
 0x169   :  { %v876_v51 = vadd.f32 %v3826_v58, %v875_v50  ;;  %v1083_v54 = vmax.f32 %v873_v47, 0.0 }
 0x16a   :  { %v1086_v53 = vmax.f32 %v884_v49, 0.0 }
 0x16b   :  { %v1084_v55 = vmax.f32 %v876_v51, 0.0 }
 0x16c   :  { %v1154_v56 = vpack.c.bf16 %v1086_v53, %v1085_v52 }
 0x16d   :  { %v1153_v57 = vpack.c.bf16 %v1084_v55, %v1083_v54  ;;  %v3335_v59 = vpop.f32.mrb[72].mxu0 }
 0x16e   :  { %v897_v60 = vadd.f32 %v3335_v59, %v3826_v58  ;;  %v888_v61 = vpop.f32.mrb[73].mxu0 }
 0x16f   :  { %v889_v62 = vadd.f32 %v3826_v58, %v888_v61  ;;  %v3336_v63 = vpop.f32.mrb[74].mxu0  ;;  %3441 = vmatprep.mubr.msk.bf16.mxu1 %vm1204_vm1, %v1153_v57 }
 0x170   :  { %v900_v0 = vadd.f32 %v3336_v63, %v3826_v58  ;;  %v891_v1 = vpop.f32.mrb[75].mxu0  ;;  %3442 = vmatmul.mubr.msk.bf16.gmra.mrb[68].mxu1 %vm1204_vm1, %v1154_v56  ;;  %v1089_v3 = vmax.f32 %v897_v60, 0.0 }
 0x171   :  { %v892_v2 = vadd.f32 %v3826_v58, %v891_v1  ;;  %v1087_v5 = vmax.f32 %v889_v62, 0.0 }
 0x172   :  { %v1090_v4 = vmax.f32 %v900_v0, 0.0 }
 0x173   :  { %v1088_v6 = vmax.f32 %v892_v2, 0.0 }
 0x174   :  { %v1156_v7 = vpack.c.bf16 %v1090_v4, %v1089_v3 }
 0x175   :  { %v1155_v8 = vpack.c.bf16 %v1088_v6, %v1087_v5  ;;  %v3339_v9 = vpop.f32.mrb[76].mxu0 }
 0x176   :  { %v913_v10 = vadd.f32 %v3339_v9, %v3826_v58  ;;  %v904_v11 = vpop.f32.mrb[77].mxu0 }
 0x177   :  { %v905_v12 = vadd.f32 %v3826_v58, %v904_v11  ;;  %v3340_v13 = vpop.f32.mrb[78].mxu0  ;;  %3445 = vmatprep.mubr.msk.bf16.mxu1 %vm1204_vm1, %v1155_v8 }
 0x178   :  { %v916_v14 = vadd.f32 %v3340_v13, %v3826_v58  ;;  %v907_v15 = vpop.f32.mrb[79].mxu0  ;;  %3446 = vmatmul.mubr.msk.bf16.gmra.mrb[72].mxu1 %vm1204_vm1, %v1156_v7  ;;  %v1093_v17 = vmax.f32 %v913_v10, 0.0 }
 0x179   :  { %v908_v16 = vadd.f32 %v3826_v58, %v907_v15  ;;  %v1091_v19 = vmax.f32 %v905_v12, 0.0 }
 0x17a   :  { %v1094_v18 = vmax.f32 %v916_v14, 0.0 }
 0x17b   :  { %v1092_v20 = vmax.f32 %v908_v16, 0.0 }
 0x17c   :  { %v1158_v21 = vpack.c.bf16 %v1094_v18, %v1093_v17 }
 0x17d   :  { %v1157_v22 = vpack.c.bf16 %v1092_v20, %v1091_v19  ;;  %v3343_v23 = vpop.f32.mrb[80].mxu0 }
 0x17e   :  { %v929_v24 = vadd.f32 %v3343_v23, %v3826_v58  ;;  %v920_v25 = vpop.f32.mrb[81].mxu0 }
 0x17f   :  { %v921_v26 = vadd.f32 %v3826_v58, %v920_v25  ;;  %v3344_v27 = vpop.f32.mrb[82].mxu0  ;;  %3449 = vmatprep.mubr.msk.bf16.mxu1 %vm1204_vm1, %v1157_v22 }
 0x180   :  { %v932_v28 = vadd.f32 %v3344_v27, %v3826_v58  ;;  %v923_v29 = vpop.f32.mrb[83].mxu0  ;;  %3450 = vmatmul.mubr.msk.bf16.gmra.mrb[76].mxu1 %vm1204_vm1, %v1158_v21  ;;  %v1097_v31 = vmax.f32 %v929_v24, 0.0 }
 0x181   :  { %v924_v30 = vadd.f32 %v3826_v58, %v923_v29  ;;  %v1095_v33 = vmax.f32 %v921_v26, 0.0 }
 0x182   :  { %v1098_v32 = vmax.f32 %v932_v28, 0.0 }
 0x183   :  { %v1096_v34 = vmax.f32 %v924_v30, 0.0 }
 0x184   :  { %v1160_v35 = vpack.c.bf16 %v1098_v32, %v1097_v31 }
 0x185   :  { %v1159_v36 = vpack.c.bf16 %v1096_v34, %v1095_v33  ;;  %v3347_v37 = vpop.f32.mrb[84].mxu0 }
 0x186   :  { %v945_v38 = vadd.f32 %v3347_v37, %v3826_v58  ;;  %v936_v39 = vpop.f32.mrb[85].mxu0 }
 0x187   :  { %v937_v40 = vadd.f32 %v3826_v58, %v936_v39  ;;  %v3348_v41 = vpop.f32.mrb[86].mxu0  ;;  %3453 = vmatprep.mubr.msk.bf16.mxu1 %vm1204_vm1, %v1159_v36 }
 0x188   :  { %v948_v42 = vadd.f32 %v3348_v41, %v3826_v58  ;;  %v939_v43 = vpop.f32.mrb[87].mxu0  ;;  %3454 = vmatmul.mubr.msk.bf16.gmra.mrb[80].mxu1 %vm1204_vm1, %v1160_v35  ;;  %v1101_v45 = vmax.f32 %v945_v38, 0.0 }
 0x189   :  { %v940_v44 = vadd.f32 %v3826_v58, %v939_v43  ;;  %v1099_v47 = vmax.f32 %v937_v40, 0.0 }
 0x18a   :  { %v1102_v46 = vmax.f32 %v948_v42, 0.0 }
 0x18b   :  { %v1100_v48 = vmax.f32 %v940_v44, 0.0 }
 0x18c   :  { %v1162_v49 = vpack.c.bf16 %v1102_v46, %v1101_v45 }
 0x18d   :  { %v1161_v50 = vpack.c.bf16 %v1100_v48, %v1099_v47  ;;  %v3351_v51 = vpop.f32.mrb[88].mxu0 }
 0x18e   :  { %v961_v52 = vadd.f32 %v3351_v51, %v3826_v58  ;;  %v952_v53 = vpop.f32.mrb[89].mxu0 }
 0x18f   :  { %v953_v54 = vadd.f32 %v3826_v58, %v952_v53  ;;  %v3352_v55 = vpop.f32.mrb[90].mxu0  ;;  %3457 = vmatprep.mubr.msk.bf16.mxu1 %vm1204_vm1, %v1161_v50 }
 0x190   :  { %v964_v56 = vadd.f32 %v3352_v55, %v3826_v58  ;;  %v955_v57 = vpop.f32.mrb[91].mxu0  ;;  %3458 = vmatmul.mubr.msk.bf16.gmra.mrb[84].mxu1 %vm1204_vm1, %v1162_v49  ;;  %v1105_v60 = vmax.f32 %v961_v52, 0.0 }
 0x191   :  { %v956_v59 = vadd.f32 %v3826_v58, %v955_v57  ;;  %v1103_v62 = vmax.f32 %v953_v54, 0.0 }
 0x192   :  { %v1106_v61 = vmax.f32 %v964_v56, 0.0 }
 0x193   :  { %v1104_v63 = vmax.f32 %v956_v59, 0.0 }
 0x194   :  { %v1164_v0 = vpack.c.bf16 %v1106_v61, %v1105_v60 }
 0x195   :  { %v1163_v1 = vpack.c.bf16 %v1104_v63, %v1103_v62  ;;  %v3355_v2 = vpop.f32.mrb[92].mxu0 }
 0x196   :  { %v977_v3 = vadd.f32 %v3355_v2, %v3826_v58  ;;  %v968_v4 = vpop.f32.mrb[93].mxu0 }
 0x197   :  { %v969_v5 = vadd.f32 %v3826_v58, %v968_v4  ;;  %v3356_v6 = vpop.f32.mrb[94].mxu0  ;;  %3461 = vmatprep.mubr.msk.bf16.mxu1 %vm1204_vm1, %v1163_v1 }
 0x198   :  { %v980_v7 = vadd.f32 %v3356_v6, %v3826_v58  ;;  %v971_v8 = vpop.f32.mrb[95].mxu0  ;;  %3462 = vmatmul.mubr.msk.bf16.gmra.mrb[88].mxu1 %vm1204_vm1, %v1164_v0  ;;  %v1109_v10 = vmax.f32 %v977_v3, 0.0  ;;  %v3987_v3 = vld [vmem:[%s4584_s4] ss:$0 sm:$0xff] }
 0x199   :  { %v972_v9 = vadd.f32 %v3826_v58, %v971_v8  ;;  %v1107_v12 = vmax.f32 %v969_v5, 0.0 }
 0x19a   :  { %v1110_v11 = vmax.f32 %v980_v7, 0.0 }
 0x19b   :  { %v1108_v13 = vmax.f32 %v972_v9, 0.0 }
 0x19c   :  { %v1166_v14 = vpack.c.bf16 %v1110_v11, %v1109_v10 }
 0x19d   :  { %v1165_v15 = vpack.c.bf16 %v1108_v13, %v1107_v12  ;;  %v3359_v16 = vpop.f32.mrb[96].mxu0 }
 0x19e   :  { %v993_v17 = vadd.f32 %v3359_v16, %v3826_v58  ;;  %v984_v18 = vpop.f32.mrb[97].mxu0 }
 0x19f   :  { %v985_v19 = vadd.f32 %v3826_v58, %v984_v18  ;;  %v3360_v20 = vpop.f32.mrb[98].mxu0  ;;  %3465 = vmatprep.mubr.msk.bf16.mxu1 %vm1204_vm1, %v1165_v15 }
 0x1a0   :  { %v996_v21 = vadd.f32 %v3360_v20, %v3826_v58  ;;  %v987_v22 = vpop.f32.mrb[99].mxu0  ;;  %3466 = vmatmul.mubr.msk.bf16.gmra.mrb[92].mxu1 %vm1204_vm1, %v1166_v14  ;;  %v1113_v24 = vmax.f32 %v993_v17, 0.0 }
 0x1a1   :  { %v988_v23 = vadd.f32 %v3826_v58, %v987_v22  ;;  %v1111_v26 = vmax.f32 %v985_v19, 0.0 }
 0x1a2   :  { %v1114_v25 = vmax.f32 %v996_v21, 0.0 }
 0x1a3   :  { %v1112_v27 = vmax.f32 %v988_v23, 0.0 }
 0x1a4   :  { %v1168_v28 = vpack.c.bf16 %v1114_v25, %v1113_v24 }
 0x1a5   :  { %v1167_v29 = vpack.c.bf16 %v1112_v27, %v1111_v26  ;;  %v3363_v30 = vpop.f32.mrb[100].mxu0 }
 0x1a6   :  { %v1009_v31 = vadd.f32 %v3363_v30, %v3826_v58  ;;  %v1000_v32 = vpop.f32.mrb[101].mxu0 }
 0x1a7   :  { %v1001_v33 = vadd.f32 %v3826_v58, %v1000_v32  ;;  %v3364_v34 = vpop.f32.mrb[102].mxu0  ;;  %3469 = vmatprep.mubr.msk.bf16.mxu1 %vm1204_vm1, %v1167_v29 }
 0x1a8   :  { %v1012_v35 = vadd.f32 %v3364_v34, %v3826_v58  ;;  %v1003_v36 = vpop.f32.mrb[103].mxu0  ;;  %3470 = vmatmul.mubr.msk.bf16.gmra.mrb[96].mxu1 %vm1204_vm1, %v1168_v28  ;;  %v1117_v38 = vmax.f32 %v1009_v31, 0.0 }
 0x1a9   :  { %v1004_v37 = vadd.f32 %v3826_v58, %v1003_v36  ;;  %v1115_v40 = vmax.f32 %v1001_v33, 0.0 }
 0x1aa   :  { %v1118_v39 = vmax.f32 %v1012_v35, 0.0 }
 0x1ab   :  { %v1116_v41 = vmax.f32 %v1004_v37, 0.0 }
 0x1ac   :  { %v1170_v42 = vpack.c.bf16 %v1118_v39, %v1117_v38 }
 0x1ad   :  { %v1169_v43 = vpack.c.bf16 %v1116_v41, %v1115_v40 }
 0x1af   :  { %3473 = vmatprep.mubr.msk.bf16.mxu1 %vm1204_vm1, %v1169_v43 }
 0x1b0   :  { %3474 = vmatmul.mubr.msk.bf16.gmra.mrb[100].mxu1 %vm1204_vm1, %v1170_v42 }
 0x1bb   :  { %v3375_v44 = vpop.f32.mrb[0].mxu1 }
 0x1bc   :  { %v1822_v45 = vrot.slane %v3375_v44, 4  ;;  %v1395_v46 = vpop.f32.mrb[1].mxu1 }
 0x1bd   :  { %v1810_v47 = vrot.slane %v1395_v46, 4  ;;  %v3376_v48 = vpop.f32.mrb[2].mxu1 }
 0x1be   :  { %v1823_v49 = vmax.f32 %v3375_v44, %v1822_v45  ;;  %v1828_v50 = vrot.slane %v3376_v48, 4  ;;  %v1398_v51 = vpop.f32.mrb[3].mxu1 }
 0x1bf   :  { %v1811_v52 = vmax.f32 %v1395_v46, %v1810_v47  ;;  %v1816_v58 = vrot.slane %v1398_v51, 4 }
 0x1c0   :  { %v1824_v53 = vrot.slane %v1823_v49, 2  ;;  %v1829_v54 = vmax.f32 %v3376_v48, %v1828_v50 }
 0x1c1   :  { %v1812_v55 = vrot.slane %v1811_v52, 2  ;;  %v1817_v56 = vmax.f32 %v1398_v51, %v1816_v58 }
 0x1c2   :  { %v1825_v57 = vmax.f32 %v1823_v49, %v1824_v53  ;;  %v1830_v59 = vrot.slane %v1829_v54, 2 }
 0x1c3   :  { %v1813_v60 = vmax.f32 %v1811_v52, %v1812_v55  ;;  %v1818_v61 = vrot.slane %v1817_v56, 2  ;;  %v3379_v62 = vpop.f32.mrb[4].mxu1 }
 0x1c4   :  { %v1826_v63 = vrot.slane %v1825_v57, 1  ;;  %v1831_v0 = vmax.f32 %v1829_v54, %v1830_v59  ;;  %v1846_v1 = vrot.slane %v3379_v62, 4  ;;  %v1411_v2 = vpop.f32.mrb[5].mxu1 }
 0x1c5   :  { %v1814_v4 = vrot.slane %v1813_v60, 1  ;;  %v1819_v5 = vmax.f32 %v1817_v56, %v1818_v61  ;;  %v1834_v6 = vrot.slane %v1411_v2, 4  ;;  %v3380_v7 = vpop.f32.mrb[6].mxu1 }
 0x1c6   :  { %v1827_v8 = vmax.f32 %v1825_v57, %v1826_v63  ;;  %v1832_v9 = vrot.slane %v1831_v0, 1  ;;  %v1847_v10 = vmax.f32 %v3379_v62, %v1846_v1  ;;  %v1852_v11 = vrot.slane %v3380_v7, 4  ;;  %v1414_v12 = vpop.f32.mrb[7].mxu1 }
 0x1c7   :  { %v1815_v13 = vmax.f32 %v1813_v60, %v1814_v4  ;;  %v1820_v14 = vrot.slane %v1819_v5, 1  ;;  %v1835_v15 = vmax.f32 %v1411_v2, %v1834_v6  ;;  %v1840_v16 = vrot.slane %v1414_v12, 4 }
 0x1c8   :  { %v2442_v17 = vadd.f32 %v3987_v3, %v1827_v8  ;;  %v1833_v18 = vmax.f32 %v1831_v0, %v1832_v9  ;;  %v1848_v19 = vrot.slane %v1847_v10, 2  ;;  %v1853_v20 = vmax.f32 %v3380_v7, %v1852_v11 }
 0x1c9   :  { %v2440_v21 = vadd.f32 %v3987_v3, %v1815_v13  ;;  %v1821_v22 = vmax.f32 %v1819_v5, %v1820_v14  ;;  %v1836_v23 = vrot.slane %v1835_v15, 2  ;;  %v1841_v24 = vmax.f32 %v1414_v12, %v1840_v16 }
 0x1ca   :  { %v2546_v25 = vmax.f32 %v2442_v17, 0.0  ;;  %v2443_v26 = vadd.f32 %v3987_v3, %v1833_v18  ;;  %v1849_v27 = vmax.f32 %v1847_v10, %v1848_v19  ;;  %v1854_v28 = vrot.slane %v1853_v20, 2 }
 0x1cb   :  { %v2544_v29 = vmax.f32 %v2440_v21, 0.0  ;;  %v2441_v30 = vadd.f32 %v3987_v3, %v1821_v22  ;;  %v1837_v31 = vmax.f32 %v1835_v15, %v1836_v23  ;;  %v1842_v32 = vrot.slane %v1841_v24, 2  ;;  %v3383_v33 = vpop.f32.mrb[8].mxu1 }
 0x1cc   :  { %v2755_v34 = vrot.slane %v2546_v25, 6  ;;  %v2547_v35 = vmax.f32 %v2443_v26, 0.0  ;;  %v1850_v36 = vrot.slane %v1849_v27, 1  ;;  %v1855_v37 = vmax.f32 %v1853_v20, %v1854_v28  ;;  %v1427_v38 = vpop.f32.mrb[9].mxu1 }
 0x1cd   :  { %v2545_v39 = vmax.f32 %v2441_v30, 0.0  ;;  %v1838_v40 = vrot.slane %v1837_v31, 1  ;;  %v1843_v41 = vmax.f32 %v1841_v24, %v1842_v32  ;;  %v1870_v42 = vrot.slane %v3383_v33, 4  ;;  %v3384_v43 = vpop.f32.mrb[10].mxu1 }
 0x1ce   :  { %v2758_v44 = vrot.slane %v2547_v35, 5  ;;  %v1851_v45 = vmax.f32 %v1849_v27, %v1850_v36  ;;  %v1856_v46 = vrot.slane %v1855_v37, 1  ;;  %v1858_v47 = vrot.slane %v1427_v38, 4  ;;  %v1430_v48 = vpop.f32.mrb[11].mxu1 }
 0x1cf   :  { %v2752_v49 = vrot.slane %v2545_v39, 7  ;;  %v1839_v50 = vmax.f32 %v1837_v31, %v1838_v40  ;;  %v1844_v51 = vrot.slane %v1843_v41, 1  ;;  %v1871_v52 = vmax.f32 %v3383_v33, %v1870_v42 }
 0x1d0   :  { %v2446_v58 = vadd.f32 %v3987_v3, %v1851_v45  ;;  %v1857_v53 = vmax.f32 %v1855_v37, %v1856_v46  ;;  %v1859_v54 = vmax.f32 %v1427_v38, %v1858_v47  ;;  %v1876_v55 = vrot.slane %v3384_v43, 4 }
 0x1d1   :  { %v2754_v56 = vsel %vm2753_vm2, %v2752_v49, %v2544_v29  ;;  %v2444_v57 = vadd.f32 %v3987_v3, %v1839_v50  ;;  %v1845_v59 = vmax.f32 %v1843_v41, %v1844_v51  ;;  %v1872_v60 = vrot.slane %v1871_v52, 2 }
 0x1d2   :  { %v2757_v61 = vsel %vm2756_vm3, %v2755_v34, %v2754_v56  ;;  %v2550_v62 = vmax.f32 %v2446_v58, 0.0  ;;  %v2447_v63 = vadd.f32 %v3987_v3, %v1857_v53  ;;  %v1860_v0 = vrot.slane %v1859_v54, 2 }
 0x1d3   :  { %v2548_v1 = vmax.f32 %v2444_v57, 0.0  ;;  %v2760_v2 = vsel %vm2759_vm4, %v2758_v44, %v2757_v61  ;;  %v2445_v4 = vadd.f32 %v3987_v3, %v1845_v59  ;;  %v1873_v5 = vmax.f32 %v1871_v52, %v1872_v60  ;;  %v3387_v6 = vpop.f32.mrb[12].mxu1 }
 0x1d4   :  { %v2767_v7 = vrot.slane %v2550_v62, 2  ;;  %v2551_v8 = vmax.f32 %v2447_v63, 0.0  ;;  %v1861_v9 = vmax.f32 %v1859_v54, %v1860_v0  ;;  %v1877_v10 = vmax.f32 %v3384_v43, %v1876_v55  ;;  %v1443_v11 = vpop.f32.mrb[13].mxu1 }
 0x1d5   :  { %v2761_v12 = vrot.slane %v2548_v1, 4  ;;  %v2549_v13 = vmax.f32 %v2445_v4, 0.0  ;;  %v1874_v14 = vrot.slane %v1873_v5, 1  ;;  %v1864_v15 = vrot.slane %v1430_v48, 4  ;;  %v3388_v16 = vpop.f32.mrb[14].mxu1 }
 0x1d6   :  { %v2770_v17 = vrot.slane %v2551_v8, 1  ;;  %v1862_v18 = vrot.slane %v1861_v9, 1  ;;  %v1878_v19 = vrot.slane %v1877_v10, 2  ;;  %v1894_v20 = vrot.slane %v3387_v6, 4  ;;  %v1446_v21 = vpop.f32.mrb[15].mxu1 }
 0x1d7   :  { %v2763_v22 = vsel %vm2762_vm5, %v2761_v12, %v2760_v2  ;;  %v2764_v23 = vrot.slane %v2549_v13, 3  ;;  %v1875_v24 = vmax.f32 %v1873_v5, %v1874_v14  ;;  %v1865_v25 = vmax.f32 %v1430_v48, %v1864_v15 }
 0x1d8   :  { %v1863_v26 = vmax.f32 %v1861_v9, %v1862_v18  ;;  %v1879_v27 = vmax.f32 %v1877_v10, %v1878_v19  ;;  %v1895_v28 = vmax.f32 %v3387_v6, %v1894_v20  ;;  %v1882_v29 = vrot.slane %v1443_v11, 4 }
 0x1d9   :  { %v2766_v30 = vsel %vm2765_vm6, %v2764_v23, %v2763_v22  ;;  %v2450_v31 = vadd.f32 %v3987_v3, %v1875_v24  ;;  %v1866_v32 = vrot.slane %v1865_v25, 2  ;;  %v1900_v33 = vrot.slane %v3388_v16, 4 }
 0x1da   :  { %v2769_v34 = vsel %vm2768_vm7, %v2767_v7, %v2766_v30  ;;  %v2448_v35 = vadd.f32 %v3987_v3, %v1863_v26  ;;  %v1880_v36 = vrot.slane %v1879_v27, 1  ;;  %v1896_v37 = vrot.slane %v1895_v28, 2 }
 0x1db   :  { %v2772_v38 = vsel %vm2771_vm8, %v2770_v17, %v2769_v34  ;;  %v1867_v39 = vmax.f32 %v1865_v25, %v1866_v32  ;;  %v1883_v40 = vmax.f32 %v1443_v11, %v1882_v29  ;;  %v3391_v41 = vpop.f32.mrb[16].mxu1  ;;  %v2554_v42 = vmax.f32 %v2450_v31, 0.0 }
 0x1dc   :  { %2954 = vst [vmem:[#allocation2] sm:$0xff] %v2772_v38  ;;  %v1881_v43 = vmax.f32 %v1879_v27, %v1880_v36  ;;  %v1897_v44 = vmax.f32 %v1895_v28, %v1896_v37  ;;  %v1901_v45 = vmax.f32 %v3388_v16, %v1900_v33  ;;  %v1459_v46 = vpop.f32.mrb[17].mxu1  ;;  %v2552_v47 = vmax.f32 %v2448_v35, 0.0 }
 0x1dd   :  { %v1868_v48 = vrot.slane %v1867_v39, 1  ;;  %v1884_v49 = vrot.slane %v1883_v40, 2  ;;  %v1888_v50 = vrot.slane %v1446_v21, 4  ;;  %v3392_v51 = vpop.f32.mrb[18].mxu1  ;;  %v1918_v54 = vrot.slane %v3391_v41, 4 }
 0x1de   :  { %v2451_v52 = vadd.f32 %v3987_v3, %v1881_v43  ;;  %v1898_v58 = vrot.slane %v1897_v44, 1  ;;  %v1902_v53 = vrot.slane %v1901_v45, 2  ;;  %v1462_v55 = vpop.f32.mrb[19].mxu1  ;;  %v1906_v60 = vrot.slane %v1459_v46, 4 }
 0x1df   :  { %v1869_v56 = vmax.f32 %v1867_v39, %v1868_v48  ;;  %v1885_v57 = vmax.f32 %v1883_v40, %v1884_v49  ;;  %v1889_v59 = vmax.f32 %v1446_v21, %v1888_v50  ;;  %v1919_v0 = vmax.f32 %v3391_v41, %v1918_v54 }
 0x1e0   :  { %v2555_v61 = vmax.f32 %v2451_v52, 0.0  ;;  %v1899_v62 = vmax.f32 %v1897_v44, %v1898_v58  ;;  %v1903_v63 = vmax.f32 %v1901_v45, %v1902_v53  ;;  %v1907_v5 = vmax.f32 %v1459_v46, %v1906_v60 }
 0x1e1   :  { %v2449_v1 = vadd.f32 %v3987_v3, %v1869_v56  ;;  %v1886_v2 = vrot.slane %v1885_v57, 1  ;;  %v1890_v4 = vrot.slane %v1889_v59, 2  ;;  %v2775_v6 = vrot.slane %v2554_v42, 6 }
 0x1e2   :  { %v2454_v7 = vadd.f32 %v3987_v3, %v1899_v62  ;;  %v1904_v8 = vrot.slane %v1903_v63, 1  ;;  %v1920_v9 = vrot.slane %v1919_v0, 2  ;;  %v1908_v13 = vrot.slane %v1907_v5, 2 }
 0x1e3   :  { %v2553_v10 = vmax.f32 %v2449_v1, 0.0  ;;  %v1887_v11 = vmax.f32 %v1885_v57, %v1886_v2  ;;  %v1891_v12 = vmax.f32 %v1889_v59, %v1890_v4  ;;  %v3395_v14 = vpop.f32.mrb[20].mxu1  ;;  %v2777_v15 = vrot.slane %v2555_v61, 5 }
 0x1e4   :  { %v1905_v16 = vmax.f32 %v1903_v63, %v1904_v8  ;;  %v1921_v17 = vmax.f32 %v1919_v0, %v1920_v9  ;;  %v1924_v18 = vrot.slane %v3392_v51, 4  ;;  %v1475_v19 = vpop.f32.mrb[21].mxu1  ;;  %v1909_v23 = vmax.f32 %v1907_v5, %v1908_v13 }
 0x1e5   :  { %v2773_v20 = vrot.slane %v2553_v10, 7  ;;  %v2452_v21 = vadd.f32 %v3987_v3, %v1887_v11  ;;  %v1892_v22 = vrot.slane %v1891_v12, 1  ;;  %v3396_v24 = vpop.f32.mrb[22].mxu1  ;;  %v2558_v25 = vmax.f32 %v2454_v7, 0.0 }
 0x1e6   :  { %v2455_v26 = vadd.f32 %v3987_v3, %v1905_v16  ;;  %v1922_v27 = vrot.slane %v1921_v17, 1  ;;  %v1925_v28 = vmax.f32 %v3392_v51, %v1924_v18  ;;  %v1478_v29 = vpop.f32.mrb[23].mxu1  ;;  %v1910_v33 = vrot.slane %v1909_v23, 1 }
 0x1e7   :  { %v2774_v30 = vsel %vm2753_vm2, %v2773_v20, %v2552_v47  ;;  %v2556_v31 = vmax.f32 %v2452_v21, 0.0  ;;  %v1893_v32 = vmax.f32 %v1891_v12, %v1892_v22  ;;  %v2783_v42 = vrot.slane %v2558_v25, 2 }
 0x1e8   :  { %v2776_v34 = vsel %vm2756_vm3, %v2775_v6, %v2774_v30  ;;  %v2559_v35 = vmax.f32 %v2455_v26, 0.0  ;;  %v1923_v36 = vmax.f32 %v1921_v17, %v1922_v27  ;;  %v1926_v37 = vrot.slane %v1925_v28, 2 }
 0x1e9   :  { %v2778_v38 = vsel %vm2759_vm4, %v2777_v15, %v2776_v34  ;;  %v2779_v39 = vrot.slane %v2556_v31, 4  ;;  %v2453_v40 = vadd.f32 %v3987_v3, %v1893_v32  ;;  %v1911_v41 = vmax.f32 %v1909_v23, %v1910_v33 }
 0x1ea   :  { %v2458_v43 = vadd.f32 %v3987_v3, %v1923_v36  ;;  %v1927_v44 = vmax.f32 %v1925_v28, %v1926_v37  ;;  %v1912_v45 = vrot.slane %v1462_v55, 4  ;;  %v1942_v49 = vrot.slane %v3395_v14, 4 }
 0x1eb   :  { %v2780_v46 = vsel %vm2762_vm5, %v2779_v39, %v2778_v38  ;;  %v2557_v47 = vmax.f32 %v2453_v40, 0.0  ;;  %v4018_v48 = vadd.f32 %v3987_v3, %v1911_v41  ;;  %v3399_v50 = vpop.f32.mrb[24].mxu1  ;;  %v2785_v51 = vrot.slane %v2559_v35, 1 }
 0x1ec   :  { %v1928_v52 = vrot.slane %v1927_v44, 1  ;;  %v1913_v58 = vmax.f32 %v1462_v55, %v1912_v45  ;;  %v1930_v53 = vrot.slane %v1475_v19, 4  ;;  %v1491_v54 = vpop.f32.mrb[25].mxu1  ;;  %v2562_v57 = vmax.f32 %v2458_v43, 0.0 }
 0x1ed   :  { %v2781_v56 = vrot.slane %v2557_v47, 3  ;;  %v1943_v59 = vmax.f32 %v3395_v14, %v1942_v49  ;;  %v1948_v60 = vrot.slane %v3396_v24, 4  ;;  %v3400_v61 = vpop.f32.mrb[26].mxu1  ;;  %v2560_v62 = vmax.f32 %v4018_v48, 0.0 }
 0x1ee   :  { %v1929_v63 = vmax.f32 %v1927_v44, %v1928_v52  ;;  %v1914_v0 = vrot.slane %v1913_v58, 2  ;;  %v1931_v1 = vmax.f32 %v1475_v19, %v1930_v53  ;;  %v4021_v2 = vpop.f32.mrb[27].mxu1  ;;  %v1936_v7 = vrot.slane %v1478_v29, 4 }
 0x1ef   :  { %v2782_v4 = vsel %vm2765_vm6, %v2781_v56, %v2780_v46  ;;  %v1944_v5 = vrot.slane %v1943_v59, 2  ;;  %v1949_v6 = vmax.f32 %v3396_v24, %v1948_v60  ;;  %v2789_v15 = vrot.slane %v2562_v57, 6 }
 0x1f0   :  { %v2784_v55 = vsel %vm2768_vm7, %v2783_v42, %v2782_v4  ;;  %v2459_v8 = vadd.f32 %v3987_v3, %v1929_v63  ;;  %v1915_v9 = vmax.f32 %v1913_v58, %v1914_v0  ;;  %v1932_v10 = vrot.slane %v1931_v1, 2 }
 0x1f1   :  { %v2786_v11 = vsel %vm2771_vm8, %v2785_v51, %v2784_v55  ;;  %v1945_v12 = vmax.f32 %v1943_v59, %v1944_v5  ;;  %v1950_v13 = vrot.slane %v1949_v6, 2  ;;  %v1937_v14 = vmax.f32 %v1478_v29, %v1936_v7 }
 0x1f2   :  { %2955 = vst [vmem:[#allocation2 + $0x8] sm:$0xff] %v2786_v11  ;;  %v1916_v16 = vrot.slane %v1915_v9, 1  ;;  %v1933_v17 = vmax.f32 %v1931_v1, %v1932_v10  ;;  %v1966_v18 = vrot.slane %v3399_v50, 4  ;;  %v1954_v22 = vrot.slane %v1491_v54, 4 }
 0x1f3   :  { %v1946_v19 = vrot.slane %v1945_v12, 1  ;;  %v1951_v20 = vmax.f32 %v1949_v6, %v1950_v13  ;;  %v1938_v21 = vrot.slane %v1937_v14, 2  ;;  %v4027_v23 = vpop.f32.mrb[28].mxu1  ;;  %v2563_v24 = vmax.f32 %v2459_v8, 0.0 }
 0x1f4   :  { %v1917_v25 = vmax.f32 %v1915_v9, %v1916_v16  ;;  %v1934_v26 = vrot.slane %v1933_v17, 1  ;;  %v1967_v27 = vmax.f32 %v3399_v50, %v1966_v18  ;;  %v4029_v28 = vpop.f32.mrb[29].mxu1  ;;  %v1955_v32 = vmax.f32 %v1491_v54, %v1954_v22 }
 0x1f5   :  { %v1947_v30 = vmax.f32 %v1945_v12, %v1946_v19  ;;  %v1952_v31 = vrot.slane %v1951_v20, 1  ;;  %v1939_v29 = vmax.f32 %v1937_v14, %v1938_v21  ;;  %v3404_v33 = vpop.f32.mrb[30].mxu1  ;;  %v1972_v37 = vrot.slane %v3400_v61, 4 }
 0x1f6   :  { %v2457_v34 = vadd.f32 %v3987_v3, %v1917_v25  ;;  %v1935_v35 = vmax.f32 %v1933_v17, %v1934_v26  ;;  %v1968_v36 = vrot.slane %v1967_v27, 2  ;;  %v4032_v38 = vpop.f32.mrb[31].mxu1  ;;  %v1956_v42 = vrot.slane %v1955_v32, 2 }
 0x1f7   :  { %v2462_v39 = vadd.f32 %v3987_v3, %v1947_v30  ;;  %v1953_v40 = vmax.f32 %v1951_v20, %v1952_v31  ;;  %v1940_v41 = vrot.slane %v1939_v29, 1  ;;  %v1973_v46 = vmax.f32 %v3400_v61, %v1972_v37 }
 0x1f8   :  { %v2561_v43 = vmax.f32 %v2457_v34, 0.0  ;;  %v2460_v44 = vadd.f32 %v3987_v3, %v1935_v35  ;;  %v1969_v45 = vmax.f32 %v1967_v27, %v1968_v36  ;;  %v1957_v51 = vmax.f32 %v1955_v32, %v1956_v42 }
 0x1f9   :  { %v2566_v47 = vmax.f32 %v2462_v39, 0.0  ;;  %v2463_v49 = vadd.f32 %v3987_v3, %v1953_v40  ;;  %v1941_v50 = vmax.f32 %v1939_v29, %v1940_v41  ;;  %v1974_v54 = vrot.slane %v1973_v46, 2 }
 0x1fa   :  { %v2787_v52 = vrot.slane %v2561_v43, 7  ;;  %v2564_v58 = vmax.f32 %v2460_v44, 0.0  ;;  %v1970_v53 = vrot.slane %v1969_v45, 1  ;;  %v2791_v56 = vrot.slane %v2563_v24, 5 }
 0x1fb   :  { %v2797_v57 = vrot.slane %v2566_v47, 2  ;;  %v2461_v59 = vadd.f32 %v3987_v3, %v1941_v50  ;;  %v1958_v60 = vrot.slane %v1957_v51, 1  ;;  %v3407_v63 = vpop.f32.mrb[32].mxu1  ;;  %v1975_v4 = vmax.f32 %v1973_v46, %v1974_v54 }
 0x1fc   :  { %v2788_v0 = vsel %vm2753_vm2, %v2787_v52, %v2560_v62  ;;  %v2793_v61 = vrot.slane %v2564_v58, 4  ;;  %v1971_v1 = vmax.f32 %v1969_v45, %v1970_v53  ;;  %v1523_v5 = vpop.f32.mrb[33].mxu1  ;;  %v2567_v7 = vmax.f32 %v2463_v49, 0.0 }
 0x1fd   :  { %v2790_v6 = vsel %vm2756_vm3, %v2789_v15, %v2788_v0  ;;  %v2565_v55 = vmax.f32 %v2461_v59, 0.0  ;;  %v1959_v8 = vmax.f32 %v1957_v51, %v1958_v60  ;;  %v3408_v9 = vpop.f32.mrb[34].mxu1  ;;  %v1976_v12 = vrot.slane %v1975_v4, 1 }
 0x1fe   :  { %v2792_v10 = vsel %vm2759_vm4, %v2791_v56, %v2790_v6  ;;  %v2466_v11 = vadd.f32 %v3987_v3, %v1971_v1  ;;  %v1960_v13 = vrot.slane %v4021_v2, 4  ;;  %v4045_v48 = vpop.f32.mrb[35].mxu1  ;;  %v1990_v15 = vrot.slane %v4027_v23, 4 }
 0x1ff   :  { %v2794_v62 = vsel %vm2762_vm5, %v2793_v61, %v2792_v10  ;;  %v2795_v14 = vrot.slane %v2565_v55, 3  ;;  %v4049_v16 = vadd.f32 %v3987_v3, %v1959_v8  ;;  %v1977_v18 = vmax.f32 %v1975_v4, %v1976_v12 }
 0x200   :  { %v2570_v17 = vmax.f32 %v2466_v11, 0.0  ;;  %v1961_v19 = vmax.f32 %v4021_v2, %v1960_v13  ;;  %v1978_v20 = vrot.slane %v4029_v28, 4  ;;  %v2799_v21 = vrot.slane %v2567_v7, 1 }
 0x201   :  { %v2796_v22 = vsel %vm2765_vm6, %v2795_v14, %v2794_v62  ;;  %v1991_v24 = vmax.f32 %v4027_v23, %v1990_v15  ;;  %v1996_v25 = vrot.slane %v3404_v33, 4  ;;  %v2568_v27 = vmax.f32 %v4049_v16, 0.0 }
 0x202   :  { %v2798_v26 = vsel %vm2768_vm7, %v2797_v57, %v2796_v22  ;;  %v2467_v30 = vadd.f32 %v3987_v3, %v1977_v18  ;;  %v1962_v31 = vrot.slane %v1961_v19, 2  ;;  %v1979_v2 = vmax.f32 %v4029_v28, %v1978_v20 }
 0x203   :  { %v2800_v29 = vsel %vm2771_vm8, %v2799_v21, %v2798_v26  ;;  %v1992_v32 = vrot.slane %v1991_v24, 2  ;;  %v1997_v34 = vmax.f32 %v3404_v33, %v1996_v25  ;;  %v4061_v35 = vpop.f32.mrb[36].mxu1  ;;  %v2803_v36 = vrot.slane %v2570_v17, 6 }
 0x204   :  { %2956 = vst [vmem:[#allocation2 + $0x10] sm:$0xff] %v2800_v29  ;;  %v1963_v37 = vmax.f32 %v1961_v19, %v1962_v31  ;;  %v1984_v23 = vrot.slane %v4032_v38, 4  ;;  %v2014_v39 = vrot.slane %v3407_v63, 4  ;;  %v4064_v40 = vpop.f32.mrb[37].mxu1  ;;  %v1980_v42 = vrot.slane %v1979_v2, 2 }
 0x205   :  { %v1993_v41 = vmax.f32 %v1991_v24, %v1992_v32  ;;  %v1998_v43 = vrot.slane %v1997_v34, 2  ;;  %v2002_v44 = vrot.slane %v1523_v5, 4  ;;  %v4066_v45 = vpop.f32.mrb[38].mxu1  ;;  %v2571_v46 = vmax.f32 %v2467_v30, 0.0 }
 0x206   :  { %v1964_v47 = vrot.slane %v1963_v37, 1  ;;  %v1985_v28 = vmax.f32 %v4032_v38, %v1984_v23  ;;  %v2015_v33 = vmax.f32 %v3407_v63, %v2014_v39  ;;  %v4069_v49 = vpop.f32.mrb[39].mxu1  ;;  %v1981_v51 = vmax.f32 %v1979_v2, %v1980_v42 }
 0x207   :  { %v1994_v50 = vrot.slane %v1993_v41, 1  ;;  %v1999_v52 = vmax.f32 %v1997_v34, %v1998_v43  ;;  %v2003_v58 = vmax.f32 %v1523_v5, %v2002_v44  ;;  %v2020_v57 = vrot.slane %v3408_v9, 4 }
 0x208   :  { %v1965_v53 = vmax.f32 %v1963_v37, %v1964_v47  ;;  %v1986_v54 = vrot.slane %v1985_v28, 2  ;;  %v2016_v56 = vrot.slane %v2015_v33, 2  ;;  %v1982_v60 = vrot.slane %v1981_v51, 1 }
 0x209   :  { %v1995_v59 = vmax.f32 %v1993_v41, %v1994_v50  ;;  %v2000_v0 = vrot.slane %v1999_v52, 1  ;;  %v2004_v61 = vrot.slane %v2003_v58, 2  ;;  %v2021_v38 = vmax.f32 %v3408_v9, %v2020_v57 }
 0x20a   :  { %v2465_v1 = vadd.f32 %v3987_v3, %v1965_v53  ;;  %v1987_v4 = vmax.f32 %v1985_v28, %v1986_v54  ;;  %v2017_v6 = vmax.f32 %v2015_v33, %v2016_v56  ;;  %v1983_v7 = vmax.f32 %v1981_v51, %v1982_v60 }
 0x20b   :  { %v2470_v63 = vadd.f32 %v3987_v3, %v1995_v59  ;;  %v2001_v55 = vmax.f32 %v1999_v52, %v2000_v0  ;;  %v2005_v8 = vmax.f32 %v2003_v58, %v2004_v61  ;;  %v4073_v10 = vpop.f32.mrb[40].mxu1  ;;  %v2022_v13 = vrot.slane %v2021_v38, 2 }
 0x20c   :  { %v2569_v5 = vmax.f32 %v2465_v1, 0.0  ;;  %v1988_v11 = vrot.slane %v1987_v4, 1  ;;  %v2018_v12 = vrot.slane %v2017_v6, 1  ;;  %v4075_v62 = vpop.f32.mrb[41].mxu1  ;;  %v2468_v15 = vadd.f32 %v3987_v3, %v1983_v7 }
 0x20d   :  { %v2574_v14 = vmax.f32 %v2470_v63, 0.0  ;;  %v2471_v17 = vadd.f32 %v3987_v3, %v2001_v55  ;;  %v2006_v18 = vrot.slane %v2005_v8, 1  ;;  %v4079_v9 = vpop.f32.mrb[42].mxu1  ;;  %v2023_v22 = vmax.f32 %v2021_v38, %v2022_v13 }
 0x20e   :  { %v2801_v19 = vrot.slane %v2569_v5, 7  ;;  %v1989_v20 = vmax.f32 %v1987_v4, %v1988_v11  ;;  %v2019_v21 = vmax.f32 %v2017_v6, %v2018_v12  ;;  %v4081_v24 = vpop.f32.mrb[43].mxu1  ;;  %v2805_v25 = vrot.slane %v2571_v46, 5 }
 0x20f   :  { %v2572_v26 = vmax.f32 %v2468_v15, 0.0  ;;  %v2575_v30 = vmax.f32 %v2471_v17, 0.0  ;;  %v2007_v31 = vmax.f32 %v2005_v8, %v2006_v18  ;;  %v2024_v34 = vrot.slane %v2023_v22, 1 }
 0x210   :  { %v2802_v29 = vsel %vm2753_vm2, %v2801_v19, %v2568_v27  ;;  %v2469_v32 = vadd.f32 %v3987_v3, %v1989_v20  ;;  %v2474_v2 = vadd.f32 %v3987_v3, %v2019_v21  ;;  %v2811_v23 = vrot.slane %v2574_v14, 2 }
 0x211   :  { %v2804_v37 = vsel %vm2756_vm3, %v2803_v36, %v2802_v29  ;;  %v2807_v39 = vrot.slane %v2572_v26, 4  ;;  %v4090_v41 = vadd.f32 %v3987_v3, %v2007_v31  ;;  %v2025_v46 = vmax.f32 %v2023_v22, %v2024_v34 }
 0x212   :  { %v2806_v42 = vsel %vm2759_vm4, %v2805_v25, %v2804_v37  ;;  %v2573_v43 = vmax.f32 %v2469_v32, 0.0  ;;  %v2578_v44 = vmax.f32 %v2474_v2, 0.0  ;;  %v2813_v27 = vrot.slane %v2575_v30, 1 }
 0x213   :  { %v2808_v16 = vsel %vm2762_vm5, %v2807_v39, %v2806_v42  ;;  %v2008_v47 = vrot.slane %v4045_v48, 4  ;;  %v2038_v28 = vrot.slane %v4061_v35, 4  ;;  %v4096_v33 = vpop.f32.mrb[44].mxu1  ;;  %v2576_v50 = vmax.f32 %v4090_v41, 0.0 }
 0x214   :  { %v2809_v36 = vrot.slane %v2573_v43, 3  ;;  %v4100_v51 = vadd.f32 %v3987_v3, %v2025_v46  ;;  %v2026_v52 = vrot.slane %v4064_v40, 4  ;;  %v4103_v58 = vpop.f32.mrb[45].mxu1  ;;  %v2044_v56 = vrot.slane %v4066_v45, 4 }
 0x215   :  { %v2009_v53 = vmax.f32 %v4045_v48, %v2008_v47  ;;  %v2039_v54 = vmax.f32 %v4061_v35, %v2038_v28  ;;  %v2032_v57 = vrot.slane %v4069_v49, 4  ;;  %v4109_v59 = vpop.f32.mrb[46].mxu1  ;;  %v4112_v0 = vrot.slane %v2578_v44, 6 }
 0x216   :  { %v2810_v60 = vsel %vm2765_vm6, %v2809_v36, %v2808_v16  ;;  %v2027_v61 = vmax.f32 %v4064_v40, %v2026_v52  ;;  %v2062_v1 = vrot.slane %v4073_v10, 4  ;;  %v4116_v4 = vpop.f32.mrb[47].mxu1  ;;  %v2045_v38 = vmax.f32 %v4066_v45, %v2044_v56 }
 0x217   :  { %v2812_v48 = vsel %vm2768_vm7, %v2811_v23, %v2810_v60  ;;  %v2010_v6 = vrot.slane %v2009_v53, 2  ;;  %v2040_v35 = vrot.slane %v2039_v54, 2  ;;  %v2579_v7 = vmax.f32 %v4100_v51, 0.0 }
 0x218   :  { %v2814_v63 = vsel %vm2771_vm8, %v2813_v27, %v2812_v48  ;;  %v2028_v55 = vrot.slane %v2027_v61, 2  ;;  %v2033_v8 = vmax.f32 %v4069_v49, %v2032_v57  ;;  %v2046_v11 = vrot.slane %v2045_v38, 2 }
 0x219   :  { %2957 = vst [vmem:[#allocation2 + $0x18] sm:$0xff] %v2814_v63  ;;  %v2011_v5 = vmax.f32 %v2009_v53, %v2010_v6  ;;  %v2041_v40 = vmax.f32 %v2039_v54, %v2040_v35  ;;  %v2063_v12 = vmax.f32 %v4073_v10, %v2062_v1  ;;  %v2050_v15 = vrot.slane %v4075_v62, 4 }
 0x21a   :  { %v2029_v13 = vmax.f32 %v2027_v61, %v2028_v55  ;;  %v2034_v14 = vrot.slane %v2033_v8, 2  ;;  %v2068_v17 = vrot.slane %v4079_v9, 4  ;;  %v2047_v19 = vmax.f32 %v2045_v38, %v2046_v11 }
 0x21b   :  { %v2012_v45 = vrot.slane %v2011_v5, 1  ;;  %v2042_v18 = vrot.slane %v2041_v40, 1  ;;  %v2064_v20 = vrot.slane %v2063_v12, 2  ;;  %v4126_v21 = vpop.f32.mrb[48].mxu1  ;;  %v2051_v25 = vmax.f32 %v4075_v62, %v2050_v15 }
 0x21c   :  { %v2030_v22 = vrot.slane %v2029_v13, 1  ;;  %v2035_v49 = vmax.f32 %v2033_v8, %v2034_v14  ;;  %v2069_v26 = vmax.f32 %v4079_v9, %v2068_v17  ;;  %v4130_v30 = vpop.f32.mrb[49].mxu1  ;;  %v2048_v29 = vrot.slane %v2047_v19, 1 }
 0x21d   :  { %v2013_v10 = vmax.f32 %v2011_v5, %v2012_v45  ;;  %v2043_v31 = vmax.f32 %v2041_v40, %v2042_v18  ;;  %v2065_v32 = vmax.f32 %v2063_v12, %v2064_v20  ;;  %v4132_v2 = vpop.f32.mrb[50].mxu1  ;;  %v2052_v23 = vrot.slane %v2051_v25, 2 }
 0x21e   :  { %v2031_v34 = vmax.f32 %v2029_v13, %v2030_v22  ;;  %v2036_v37 = vrot.slane %v2035_v49, 1  ;;  %v2070_v39 = vrot.slane %v2069_v26, 2  ;;  %v4134_v42 = vpop.f32.mrb[51].mxu1  ;;  %v2049_v44 = vmax.f32 %v2047_v19, %v2048_v29 }
 0x21f   :  { %v2473_v43 = vadd.f32 %v3987_v3, %v2013_v10  ;;  %v2478_v62 = vadd.f32 %v3987_v3, %v2043_v31  ;;  %v2066_v9 = vrot.slane %v2065_v32, 1  ;;  %v2053_v27 = vmax.f32 %v2051_v25, %v2052_v23 }
 0x220   :  { %v2476_v46 = vadd.f32 %v3987_v3, %v2031_v34  ;;  %v2037_v16 = vmax.f32 %v2035_v49, %v2036_v37  ;;  %v2071_v47 = vmax.f32 %v2069_v26, %v2070_v39  ;;  %v2479_v51 = vadd.f32 %v3987_v3, %v2049_v44 }
 0x221   :  { %v2577_v28 = vmax.f32 %v2473_v43, 0.0  ;;  %v2582_v36 = vmax.f32 %v2478_v62, 0.0  ;;  %v2067_v52 = vmax.f32 %v2065_v32, %v2066_v9  ;;  %v2054_v56 = vrot.slane %v2053_v27, 1 }
 0x222   :  { %v2580_v53 = vmax.f32 %v2476_v46, 0.0  ;;  %v2477_v54 = vadd.f32 %v3987_v3, %v2037_v16  ;;  %v2072_v57 = vrot.slane %v2071_v47, 1  ;;  %v2819_v60 = vrot.slane %v2579_v7, 5 }
 0x223   :  { %v2815_v61 = vrot.slane %v2577_v28, 7  ;;  %v2583_v1 = vmax.f32 %v2479_v51, 0.0  ;;  %v2482_v48 = vadd.f32 %v3987_v3, %v2067_v52  ;;  %v4142_v6 = vpop.f32.mrb[52].mxu1  ;;  %v2055_v63 = vmax.f32 %v2053_v27, %v2054_v56 }
 0x224   :  { %v2821_v35 = vrot.slane %v2580_v53, 4  ;;  %v2581_v38 = vmax.f32 %v2477_v54, 0.0  ;;  %v2073_v55 = vmax.f32 %v2071_v47, %v2072_v57  ;;  %v4144_v8 = vpop.f32.mrb[53].mxu1  ;;  %v2825_v40 = vrot.slane %v2582_v36, 2 }
 0x225   :  { %v2816_v5 = vsel %vm2753_vm2, %v2815_v61, %v2576_v50  ;;  %v2586_v11 = vmax.f32 %v2482_v48, 0.0  ;;  %v2056_v7 = vrot.slane %v4081_v24, 4  ;;  %v4150_v12 = vpop.f32.mrb[54].mxu1  ;;  %v4155_v15 = vadd.f32 %v3987_v3, %v2055_v63 }
 0x226   :  { %v2818_v13 = vsel %vm2756_vm3, %v4112_v0, %v2816_v5  ;;  %v2823_v14 = vrot.slane %v2581_v38, 3  ;;  %v4158_v17 = vadd.f32 %v3987_v3, %v2073_v55  ;;  %v4160_v45 = vpop.f32.mrb[55].mxu1  ;;  %v2827_v50 = vrot.slane %v2583_v1, 1 }
 0x227   :  { %v2820_v41 = vsel %vm2759_vm4, %v2819_v60, %v2818_v13  ;;  %v2057_v18 = vmax.f32 %v4081_v24, %v2056_v7  ;;  %v2086_v19 = vrot.slane %v4096_v33, 4  ;;  %v4166_v22 = vrot.slane %v2586_v11, 6 }
 0x228   :  { %v2822_v20 = vsel %vm2762_vm5, %v2821_v35, %v2820_v41  ;;  %v2584_v0 = vmax.f32 %v4155_v15, 0.0  ;;  %v2074_v49 = vrot.slane %v4103_v58, 4  ;;  %v2092_v31 = vrot.slane %v4109_v59, 4 }
 0x229   :  { %v2824_v25 = vsel %vm2765_vm6, %v2823_v14, %v2822_v20  ;;  %v2058_v26 = vrot.slane %v2057_v18, 2  ;;  %v2087_v10 = vmax.f32 %v4096_v33, %v2086_v19  ;;  %v2587_v24 = vmax.f32 %v4158_v17, 0.0 }
 0x22a   :  { %v2826_v29 = vsel %vm2768_vm7, %v2825_v40, %v2824_v25  ;;  %v2075_v32 = vmax.f32 %v4103_v58, %v2074_v49  ;;  %v2080_v34 = vrot.slane %v4116_v4, 4  ;;  %v2093_v43 = vmax.f32 %v4109_v59, %v2092_v31 }
 0x22b   :  { %v2828_v37 = vsel %vm2771_vm8, %v2827_v50, %v2826_v29  ;;  %v2059_v23 = vmax.f32 %v2057_v18, %v2058_v26  ;;  %v2088_v39 = vrot.slane %v2087_v10, 2  ;;  %v4179_v62 = vpop.f32.mrb[56].mxu1  ;;  %v2110_v9 = vrot.slane %v4126_v21, 4  ;;  %v4204_v26 = vld [vmem:[%s4584_s4] ss:$0 sm:$0xff] }
 0x22c   :  { %2958 = vst [vmem:[#allocation2 + $0x20] sm:$0xff] %v2828_v37  ;;  %v2076_v33 = vrot.slane %v2075_v32, 2  ;;  %v2081_v44 = vmax.f32 %v4116_v4, %v2080_v34  ;;  %v2098_v46 = vrot.slane %v4130_v30, 4  ;;  %v4184_v16 = vpop.f32.mrb[57].mxu1  ;;  %v2094_v47 = vrot.slane %v2093_v43, 2 }
 0x22d   :  { %v2060_v58 = vrot.slane %v2059_v23, 1  ;;  %v2089_v27 = vmax.f32 %v2087_v10, %v2088_v39  ;;  %v2116_v28 = vrot.slane %v4132_v2, 4  ;;  %v4187_v36 = vpop.f32.mrb[58].mxu1  ;;  %v2111_v52 = vmax.f32 %v4126_v21, %v2110_v9 }
 0x22e   :  { %v2077_v59 = vmax.f32 %v2075_v32, %v2076_v33  ;;  %v2082_v51 = vrot.slane %v2081_v44, 2  ;;  %v2099_v53 = vmax.f32 %v4130_v30, %v2098_v46  ;;  %v4191_v4 = vpop.f32.mrb[59].mxu1  ;;  %v2095_v57 = vmax.f32 %v2093_v43, %v2094_v47 }
 0x22f   :  { %v2061_v54 = vmax.f32 %v2059_v23, %v2060_v58  ;;  %v2090_v56 = vrot.slane %v2089_v27, 1  ;;  %v2117_v60 = vmax.f32 %v4132_v2, %v2116_v28  ;;  %v2112_v48 = vrot.slane %v2111_v52, 2 }
 0x230   :  { %v2078_v61 = vrot.slane %v2077_v59, 1  ;;  %v2083_v1 = vmax.f32 %v2081_v44, %v2082_v51  ;;  %v2100_v35 = vrot.slane %v2099_v53, 2  ;;  %v2096_v55 = vrot.slane %v2095_v57, 1 }
 0x231   :  { %v2481_v38 = vadd.f32 %v3987_v3, %v2061_v54  ;;  %v2091_v63 = vmax.f32 %v2089_v27, %v2090_v56  ;;  %v2118_v5 = vrot.slane %v2117_v60, 2  ;;  %v2113_v11 = vmax.f32 %v2111_v52, %v2112_v48 }
 0x232   :  { %v2079_v40 = vmax.f32 %v2077_v59, %v2078_v61  ;;  %v2084_v21 = vrot.slane %v2083_v1, 1  ;;  %v2101_v30 = vmax.f32 %v2099_v53, %v2100_v35  ;;  %v2097_v14 = vmax.f32 %v2095_v57, %v2096_v55 }
 0x233   :  { %v2585_v7 = vmax.f32 %v2481_v38, 0.0  ;;  %v2486_v13 = vadd.f32 %v3987_v3, %v2091_v63  ;;  %v2119_v17 = vmax.f32 %v2117_v60, %v2118_v5  ;;  %v4196_v41 = vpop.f32.mrb[60].mxu1  ;;  %v2114_v18 = vrot.slane %v2113_v11, 1 }
 0x234   :  { %v2484_v2 = vadd.f32 %v3987_v3, %v2079_v40  ;;  %v2085_v50 = vmax.f32 %v2083_v1, %v2084_v21  ;;  %v2102_v19 = vrot.slane %v2101_v30, 1  ;;  %v4199_v20 = vpop.f32.mrb[61].mxu1  ;;  %v2487_v10 = vadd.f32 %v4204_v26, %v2097_v14 }
 0x235   :  { %v2829_v49 = vrot.slane %v2585_v7, 7  ;;  %v2590_v25 = vmax.f32 %v2486_v13, 0.0  ;;  %v2120_v31 = vrot.slane %v2119_v17, 1  ;;  %v4207_v29 = vpop.f32.mrb[62].mxu1  ;;  %v2115_v34 = vmax.f32 %v2113_v11, %v2114_v18 }
 0x236   :  { %v2588_v32 = vmax.f32 %v2484_v2, 0.0  ;;  %v2485_v3 = vadd.f32 %v4204_v26, %v2085_v50  ;;  %v2103_v37 = vmax.f32 %v2101_v30, %v2102_v19  ;;  %v4210_v23 = vpop.f32.mrb[63].mxu1  ;;  %v2833_v39 = vrot.slane %v2587_v24, 5 }
 0x237   :  { %v2830_v43 = vsel %vm2753_vm2, %v2829_v49, %v2584_v0  ;;  %v2591_v33 = vmax.f32 %v2487_v10, 0.0  ;;  %v2121_v44 = vmax.f32 %v2119_v17, %v2120_v31  ;;  %v2490_v27 = vadd.f32 %v4204_v26, %v2115_v34 }
 0x238   :  { %v2832_v9 = vsel %vm2756_vm3, %v4166_v22, %v2830_v43  ;;  %v2835_v46 = vrot.slane %v2588_v32, 4  ;;  %v2589_v58 = vmax.f32 %v2485_v3, 0.0  ;;  %v2839_v47 = vrot.slane %v2590_v25, 2 }
 0x239   :  { %v2834_v28 = vsel %vm2759_vm4, %v2833_v39, %v2832_v9  ;;  %v4220_v59 = vadd.f32 %v4204_v26, %v2103_v37  ;;  %v4223_v24 = vadd.f32 %v4204_v26, %v2121_v44  ;;  %v2594_v51 = vmax.f32 %v2490_v27, 0.0 }
 0x23a   :  { %v2836_v15 = vsel %vm2762_vm5, %v2835_v46, %v2834_v28  ;;  %v2837_v0 = vrot.slane %v2589_v58, 3  ;;  %v2104_v52 = vrot.slane %v4134_v42, 4  ;;  %v2841_v22 = vrot.slane %v2591_v33, 1 }
 0x23b   :  { %v2592_v53 = vmax.f32 %v4220_v59, 0.0  ;;  %v2134_v54 = vrot.slane %v4142_v6, 4  ;;  %v2122_v56 = vrot.slane %v4144_v8, 4  ;;  %v4230_v57 = vpop.f32.mrb[64].mxu1  ;;  %v2595_v61 = vmax.f32 %v4223_v24, 0.0 }
 0x23c   :  { %v2838_v60 = vsel %vm2765_vm6, %v2837_v0, %v2836_v15  ;;  %v2105_v1 = vmax.f32 %v4134_v42, %v2104_v52  ;;  %v2140_v48 = vrot.slane %v4150_v12, 4  ;;  %v4236_v35 = vpop.f32.mrb[65].mxu1  ;;  %v4239_v63 = vrot.slane %v2594_v51, 6 }
 0x23d   :  { %v2840_v38 = vsel %vm2768_vm7, %v2839_v47, %v2838_v60  ;;  %v2135_v55 = vmax.f32 %v4142_v6, %v2134_v54  ;;  %v2123_v5 = vmax.f32 %v4144_v8, %v2122_v56  ;;  %v4243_v40 = vpop.f32.mrb[66].mxu1  ;;  %v2128_v42 = vrot.slane %v4160_v45, 4 }
 0x23e   :  { %v2842_v21 = vsel %vm2771_vm8, %v2841_v22, %v2840_v38  ;;  %v2106_v11 = vrot.slane %v2105_v1, 2  ;;  %v2141_v30 = vmax.f32 %v4150_v12, %v2140_v48  ;;  %v4248_v7 = vpop.f32.mrb[67].mxu1  ;;  %v2158_v17 = vrot.slane %v4179_v62, 4 }
 0x23f   :  { %2959 = vst [vmem:[#allocation2 + $0x28] sm:$0xff] %v2842_v21  ;;  %v2136_v13 = vrot.slane %v2135_v55, 2  ;;  %v2124_v14 = vrot.slane %v2123_v5, 2  ;;  %v2146_v6 = vrot.slane %v4184_v16, 4  ;;  %v2129_v50 = vmax.f32 %v4160_v45, %v2128_v42 }
 0x240   :  { %v2107_v2 = vmax.f32 %v2105_v1, %v2106_v11  ;;  %v2142_v8 = vrot.slane %v2141_v30, 2  ;;  %v2164_v18 = vrot.slane %v4187_v36, 4  ;;  %v2159_v12 = vmax.f32 %v4179_v62, %v2158_v17 }
 0x241   :  { %v2137_v19 = vmax.f32 %v2135_v55, %v2136_v13  ;;  %v2125_v49 = vmax.f32 %v2123_v5, %v2124_v14  ;;  %v2147_v25 = vmax.f32 %v4184_v16, %v2146_v6  ;;  %v2130_v32 = vrot.slane %v2129_v50, 2 }
 0x242   :  { %v2108_v10 = vrot.slane %v2107_v2, 1  ;;  %v2143_v31 = vmax.f32 %v2141_v30, %v2142_v8  ;;  %v2165_v3 = vmax.f32 %v4187_v36, %v2164_v18  ;;  %v2160_v39 = vrot.slane %v2159_v12, 2 }
 0x243   :  { %v2138_v34 = vrot.slane %v2137_v19, 1  ;;  %v2126_v37 = vrot.slane %v2125_v49, 1  ;;  %v2148_v43 = vrot.slane %v2147_v25, 2  ;;  %v4257_v33 = vpop.f32.mrb[68].mxu1  ;;  %v2131_v9 = vmax.f32 %v2129_v50, %v2130_v32 }
 0x244   :  { %v2109_v45 = vmax.f32 %v2107_v2, %v2108_v10  ;;  %v2144_v44 = vrot.slane %v2143_v31, 1  ;;  %v2166_v46 = vrot.slane %v2165_v3, 2  ;;  %v4259_v58 = vpop.f32.mrb[69].mxu1  ;;  %v2161_v16 = vmax.f32 %v2159_v12, %v2160_v39 }
 0x245   :  { %v2139_v62 = vmax.f32 %v2137_v19, %v2138_v34  ;;  %v2127_v27 = vmax.f32 %v2125_v49, %v2126_v37  ;;  %v2149_v47 = vmax.f32 %v2147_v25, %v2148_v43  ;;  %v4261_v28 = vpop.f32.mrb[70].mxu1  ;;  %v2132_v0 = vrot.slane %v2131_v9, 1 }
 0x246   :  { %v2489_v36 = vadd.f32 %v4204_v26, %v2109_v45  ;;  %v2145_v15 = vmax.f32 %v2143_v31, %v2144_v44  ;;  %v2167_v51 = vmax.f32 %v2165_v3, %v2166_v46  ;;  %v4264_v52 = vpop.f32.mrb[71].mxu1  ;;  %v2162_v56 = vrot.slane %v2161_v16, 1 }
 0x247   :  { %v2494_v22 = vadd.f32 %v4204_v26, %v2139_v62  ;;  %v2492_v54 = vadd.f32 %v4204_v26, %v2127_v27  ;;  %v2150_v60 = vrot.slane %v2149_v47, 1  ;;  %v2133_v38 = vmax.f32 %v2131_v9, %v2132_v0 }
 0x248   :  { %v2593_v1 = vmax.f32 %v2489_v36, 0.0  ;;  %v2495_v48 = vadd.f32 %v4204_v26, %v2145_v15  ;;  %v2168_v55 = vrot.slane %v2167_v51, 1  ;;  %v2163_v11 = vmax.f32 %v2161_v16, %v2162_v56 }
 0x249   :  { %v2598_v5 = vmax.f32 %v2494_v22, 0.0  ;;  %v2596_v21 = vmax.f32 %v2492_v54, 0.0  ;;  %v2151_v30 = vmax.f32 %v2149_v47, %v2150_v60  ;;  %v2493_v14 = vadd.f32 %v4204_v26, %v2133_v38 }
 0x24a   :  { %v2843_v42 = vrot.slane %v2593_v1, 7  ;;  %v2599_v13 = vmax.f32 %v2495_v48, 0.0  ;;  %v2169_v17 = vmax.f32 %v2167_v51, %v2168_v55  ;;  %v2847_v6 = vrot.slane %v2595_v61, 5 }
 0x24b   :  { %v2849_v2 = vrot.slane %v2596_v21, 4  ;;  %v2498_v8 = vadd.f32 %v4204_v26, %v2163_v11  ;;  %v4274_v50 = vadd.f32 %v4204_v26, %v2151_v30  ;;  %v4276_v18 = vpop.f32.mrb[72].mxu1  ;;  %v2853_v49 = vrot.slane %v2598_v5, 2 }
 0x24c   :  { %v2844_v19 = vsel %vm2753_vm2, %v2843_v42, %v2592_v53  ;;  %v2597_v12 = vmax.f32 %v2493_v14, 0.0  ;;  %v4282_v25 = vadd.f32 %v4204_v26, %v2169_v17  ;;  %v4284_v10 = vpop.f32.mrb[73].mxu1  ;;  %v2855_v61 = vrot.slane %v2599_v13, 1 }
 0x24d   :  { %v2846_v24 = vsel %vm2756_vm3, %v4239_v63, %v2844_v19  ;;  %v2602_v31 = vmax.f32 %v2498_v8, 0.0  ;;  %v2152_v32 = vrot.slane %v4191_v4, 4  ;;  %v4289_v3 = vpop.f32.mrb[74].mxu1  ;;  %v2600_v53 = vmax.f32 %v4274_v50, 0.0 }
 0x24e   :  { %v2848_v59 = vsel %vm2759_vm4, %v2847_v6, %v2846_v24  ;;  %v2851_v34 = vrot.slane %v2597_v12, 3  ;;  %v2182_v37 = vrot.slane %v4196_v41, 4  ;;  %v4294_v39 = vpop.f32.mrb[75].mxu1  ;;  %v2603_v45 = vmax.f32 %v4282_v25, 0.0 }
 0x24f   :  { %v2850_v43 = vsel %vm2762_vm5, %v2849_v2, %v2848_v59  ;;  %v2153_v63 = vmax.f32 %v4191_v4, %v2152_v32  ;;  %v2170_v44 = vrot.slane %v4199_v20, 4  ;;  %v4301_v46 = vrot.slane %v2602_v31, 6 }
 0x250   :  { %v2852_v9 = vsel %vm2765_vm6, %v2851_v34, %v2850_v43  ;;  %v2183_v62 = vmax.f32 %v4196_v41, %v2182_v37  ;;  %v2188_v27 = vrot.slane %v4207_v29, 4  ;;  %v2176_v15 = vrot.slane %v4210_v23, 4 }
 0x251   :  { %v2854_v16 = vsel %vm2768_vm7, %v2853_v49, %v2852_v9  ;;  %v2154_v47 = vrot.slane %v2153_v63, 2  ;;  %v2171_v36 = vmax.f32 %v4199_v20, %v2170_v44  ;;  %v2206_v22 = vrot.slane %v4230_v57, 4 }
 0x252   :  { %v2856_v0 = vsel %vm2771_vm8, %v2855_v61, %v2854_v16  ;;  %v2184_v4 = vrot.slane %v2183_v62, 2  ;;  %v2189_v51 = vmax.f32 %v4207_v29, %v2188_v27  ;;  %v2177_v41 = vmax.f32 %v4210_v23, %v2176_v15 }
 0x253   :  { %2960 = vst [vmem:[#allocation2 + $0x30] sm:$0xff] %v2856_v0  ;;  %v2155_v54 = vmax.f32 %v2153_v63, %v2154_v47  ;;  %v2172_v56 = vrot.slane %v2171_v36, 2  ;;  %v2194_v60 = vrot.slane %v4236_v35, 4  ;;  %v4313_v1 = vpop.f32.mrb[76].mxu1  ;;  %v2207_v38 = vmax.f32 %v4230_v57, %v2206_v22 }
 0x254   :  { %v2185_v48 = vmax.f32 %v2183_v62, %v2184_v4  ;;  %v2190_v20 = vrot.slane %v2189_v51, 2  ;;  %v2212_v55 = vrot.slane %v4243_v40, 4  ;;  %v4317_v5 = vpop.f32.mrb[77].mxu1  ;;  %v2178_v11 = vrot.slane %v2177_v41, 2 }
 0x255   :  { %v2156_v29 = vrot.slane %v2155_v54, 1  ;;  %v2173_v21 = vmax.f32 %v2171_v36, %v2172_v56  ;;  %v2195_v30 = vmax.f32 %v4236_v35, %v2194_v60  ;;  %v4320_v42 = vpop.f32.mrb[78].mxu1  ;;  %v2208_v14 = vrot.slane %v2207_v38, 2 }
 0x256   :  { %v2186_v23 = vrot.slane %v2185_v48, 1  ;;  %v2191_v13 = vmax.f32 %v2189_v51, %v2190_v20  ;;  %v2213_v17 = vmax.f32 %v4243_v40, %v2212_v55  ;;  %v4323_v6 = vpop.f32.mrb[79].mxu1  ;;  %v2179_v8 = vmax.f32 %v2177_v41, %v2178_v11 }
 0x257   :  { %v2157_v2 = vmax.f32 %v2155_v54, %v2156_v29  ;;  %v2174_v57 = vrot.slane %v2173_v21, 1  ;;  %v2196_v19 = vrot.slane %v2195_v30, 2  ;;  %v2209_v24 = vmax.f32 %v2207_v38, %v2208_v14 }
 0x258   :  { %v2187_v49 = vmax.f32 %v2185_v48, %v2186_v23  ;;  %v2192_v12 = vrot.slane %v2191_v13, 1  ;;  %v2214_v61 = vrot.slane %v2213_v17, 2  ;;  %v2180_v32 = vrot.slane %v2179_v8, 1 }
 0x259   :  { %v2497_v31 = vadd.f32 %v4204_v26, %v2157_v2  ;;  %v2175_v35 = vmax.f32 %v2173_v21, %v2174_v57  ;;  %v2197_v59 = vmax.f32 %v2195_v30, %v2196_v19  ;;  %v2210_v43 = vrot.slane %v2209_v24, 1 }
 0x25a   :  { %v2502_v34 = vadd.f32 %v4204_v26, %v2187_v49  ;;  %v2193_v37 = vmax.f32 %v2191_v13, %v2192_v12  ;;  %v2215_v40 = vmax.f32 %v2213_v17, %v2214_v61  ;;  %v2181_v9 = vmax.f32 %v2179_v8, %v2180_v32 }
 0x25b   :  { %v2601_v63 = vmax.f32 %v2497_v31, 0.0  ;;  %v2500_v44 = vadd.f32 %v4204_v26, %v2175_v35  ;;  %v2198_v62 = vrot.slane %v2197_v59, 1  ;;  %v4328_v27 = vpop.f32.mrb[80].mxu1  ;;  %v2211_v36 = vmax.f32 %v2209_v24, %v2210_v43 }
 0x25c   :  { %v2606_v16 = vmax.f32 %v2502_v34, 0.0  ;;  %v2503_v47 = vadd.f32 %v4204_v26, %v2193_v37  ;;  %v2216_v15 = vrot.slane %v2215_v40, 1  ;;  %v4331_v0 = vpop.f32.mrb[81].mxu1  ;;  %v2501_v22 = vadd.f32 %v4204_v26, %v2181_v9 }
 0x25d   :  { %v2857_v4 = vrot.slane %v2601_v63, 7  ;;  %v2604_v51 = vmax.f32 %v2500_v44, 0.0  ;;  %v2199_v54 = vmax.f32 %v2197_v59, %v2198_v62  ;;  %v4334_v56 = vpop.f32.mrb[82].mxu1  ;;  %v2861_v41 = vrot.slane %v2603_v45, 5 }
 0x25e   :  { %v2607_v60 = vmax.f32 %v2503_v47, 0.0  ;;  %v4339_v48 = vadd.f32 %v4204_v26, %v2211_v36  ;;  %v2217_v20 = vmax.f32 %v2215_v40, %v2216_v15  ;;  %v4341_v38 = vpop.f32.mrb[83].mxu1  ;;  %v2605_v21 = vmax.f32 %v2501_v22, 0.0 }
 0x25f   :  { %v2858_v55 = vsel %vm2753_vm2, %v2857_v4, %v2600_v53  ;;  %v2863_v29 = vrot.slane %v2604_v51, 4  ;;  %v4347_v11 = vadd.f32 %v4204_v26, %v2199_v54  ;;  %v2867_v45 = vrot.slane %v2606_v16, 2 }
 0x260   :  { %v2860_v25 = vsel %vm2756_vm3, %v4301_v46, %v2858_v55  ;;  %v4352_v30 = vadd.f32 %v4204_v26, %v2217_v20  ;;  %v2869_v13 = vrot.slane %v2607_v60, 1  ;;  %v2865_v14 = vrot.slane %v2605_v21, 3 }
 0x261   :  { %v2862_v23 = vsel %vm2759_vm4, %v2861_v41, %v2860_v25  ;;  %v2200_v50 = vrot.slane %v4248_v7, 4  ;;  %v2610_v17 = vmax.f32 %v4339_v48, 0.0  ;;  %v2608_v2 = vmax.f32 %v4347_v11, 0.0 }
 0x262   :  { %v2864_v53 = vsel %vm2762_vm5, %v2863_v29, %v2862_v23  ;;  %v2230_v57 = vrot.slane %v4257_v33, 4  ;;  %v2218_v19 = vrot.slane %v4259_v58, 4  ;;  %v2236_v49 = vrot.slane %v4261_v28, 4 }
 0x263   :  { %v2866_v46 = vsel %vm2765_vm6, %v2865_v14, %v2864_v53  ;;  %v2201_v8 = vmax.f32 %v4248_v7, %v2200_v50  ;;  %v4364_v12 = vpop.f32.mrb[84].mxu1  ;;  %v2611_v61 = vmax.f32 %v4352_v30, 0.0  ;;  %v2224_v35 = vrot.slane %v4264_v52, 4 }
 0x264   :  { %v2868_v24 = vsel %vm2768_vm7, %v2867_v45, %v2866_v46  ;;  %v2231_v31 = vmax.f32 %v4257_v33, %v2230_v57  ;;  %v4370_v32 = vpop.f32.mrb[85].mxu1  ;;  %v2219_v7 = vmax.f32 %v4259_v58, %v2218_v19  ;;  %v2237_v37 = vmax.f32 %v4261_v28, %v2236_v49 }
 0x265   :  { %v2870_v59 = vsel %vm2771_vm8, %v2869_v13, %v2868_v24  ;;  %v2202_v34 = vrot.slane %v2201_v8, 2  ;;  %v4375_v43 = vpop.f32.mrb[86].mxu1  ;;  %v2225_v63 = vmax.f32 %v4264_v52, %v2224_v35  ;;  %v2254_v44 = vrot.slane %v4276_v18, 4 }
 0x266   :  { %2961 = vst [vmem:[#allocation2 + $0x38] sm:$0xff] %v2870_v59  ;;  %v2232_v40 = vrot.slane %v2231_v31, 2  ;;  %v2242_v33 = vrot.slane %v4284_v10, 4  ;;  %v4380_v9 = vpop.f32.mrb[87].mxu1  ;;  %v2220_v16 = vrot.slane %v2219_v7, 2  ;;  %v2238_v47 = vrot.slane %v2237_v37, 2 }
 0x267   :  { %v2203_v62 = vmax.f32 %v2201_v8, %v2202_v34  ;;  %v2260_v36 = vrot.slane %v4289_v3, 4  ;;  %v2226_v15 = vrot.slane %v2225_v63, 2  ;;  %v2255_v28 = vmax.f32 %v4276_v18, %v2254_v44 }
 0x268   :  { %v2233_v58 = vmax.f32 %v2231_v31, %v2232_v40  ;;  %v2243_v4 = vmax.f32 %v4284_v10, %v2242_v33  ;;  %v2221_v22 = vmax.f32 %v2219_v7, %v2220_v16  ;;  %v2239_v52 = vmax.f32 %v2237_v37, %v2238_v47 }
 0x269   :  { %v2204_v51 = vrot.slane %v2203_v62, 1  ;;  %v2261_v54 = vmax.f32 %v4289_v3, %v2260_v36  ;;  %v2227_v60 = vmax.f32 %v2225_v63, %v2226_v15  ;;  %v2256_v20 = vrot.slane %v2255_v28, 2 }
 0x26a   :  { %v2234_v41 = vrot.slane %v2233_v58, 1  ;;  %v2244_v55 = vrot.slane %v2243_v4, 2  ;;  %v2222_v21 = vrot.slane %v2221_v22, 1  ;;  %v2240_v25 = vrot.slane %v2239_v52, 1 }
 0x26b   :  { %v2205_v29 = vmax.f32 %v2203_v62, %v2204_v51  ;;  %v2262_v45 = vrot.slane %v2261_v54, 2  ;;  %v4386_v23 = vpop.f32.mrb[88].mxu1  ;;  %v2228_v14 = vrot.slane %v2227_v60, 1  ;;  %v2257_v18 = vmax.f32 %v2255_v28, %v2256_v20 }
 0x26c   :  { %v2235_v13 = vmax.f32 %v2233_v58, %v2234_v41  ;;  %v2245_v50 = vmax.f32 %v2243_v4, %v2244_v55  ;;  %v4388_v10 = vpop.f32.mrb[89].mxu1  ;;  %v2223_v57 = vmax.f32 %v2221_v22, %v2222_v21  ;;  %v2241_v3 = vmax.f32 %v2239_v52, %v2240_v25 }
 0x26d   :  { %v2505_v53 = vadd.f32 %v4204_v26, %v2205_v29  ;;  %v2263_v46 = vmax.f32 %v2261_v54, %v2262_v45  ;;  %v4391_v8 = vpop.f32.mrb[90].mxu1  ;;  %v2229_v49 = vmax.f32 %v2227_v60, %v2228_v14  ;;  %v2258_v24 = vrot.slane %v2257_v18, 1 }
 0x26e   :  { %v2510_v19 = vadd.f32 %v4204_v26, %v2235_v13  ;;  %v2246_v31 = vrot.slane %v2245_v50, 1  ;;  %v4394_v35 = vpop.f32.mrb[91].mxu1  ;;  %v2508_v34 = vadd.f32 %v4204_v26, %v2223_v57  ;;  %v2511_v7 = vadd.f32 %v4204_v26, %v2241_v3 }
 0x26f   :  { %v2609_v59 = vmax.f32 %v2505_v53, 0.0  ;;  %v2264_v37 = vrot.slane %v2263_v46, 1  ;;  %v2509_v63 = vadd.f32 %v4204_v26, %v2229_v49  ;;  %v2259_v44 = vmax.f32 %v2257_v18, %v2258_v24 }
 0x270   :  { %v2614_v40 = vmax.f32 %v2510_v19, 0.0  ;;  %v2247_v33 = vmax.f32 %v2245_v50, %v2246_v31  ;;  %v2612_v16 = vmax.f32 %v2508_v34, 0.0  ;;  %v2615_v47 = vmax.f32 %v2511_v7, 0.0 }
 0x271   :  { %v2871_v62 = vrot.slane %v2609_v59, 7  ;;  %v2265_v36 = vmax.f32 %v2263_v46, %v2264_v37  ;;  %v2873_v58 = vrot.slane %v2610_v17, 6  ;;  %v2613_v15 = vmax.f32 %v2509_v63, 0.0 }
 0x272   :  { %v4402_v28 = vadd.f32 %v4204_v26, %v2259_v44  ;;  %v2875_v4 = vrot.slane %v2611_v61, 5  ;;  %v2877_v22 = vrot.slane %v2612_v16, 4  ;;  %v2881_v17 = vrot.slane %v2614_v40, 2 }
 0x273   :  { %v2872_v51 = vsel %vm2753_vm2, %v2871_v62, %v2608_v2  ;;  %v4410_v52 = vadd.f32 %v4204_v26, %v2265_v36  ;;  %v4412_v54 = vpop.f32.mrb[92].mxu1  ;;  %v2879_v41 = vrot.slane %v2613_v15, 3  ;;  %v4416_v60 = vadd.f32 %v4204_v26, %v2247_v33 }
 0x274   :  { %v2874_v48 = vsel %vm2756_vm3, %v2873_v58, %v2872_v51  ;;  %v4418_v20 = vpop.f32.mrb[93].mxu1  ;;  %v2883_v11 = vrot.slane %v2615_v47, 1  ;;  %v2248_v2 = vrot.slane %v4294_v39, 4  ;;  %v2278_v61 = vrot.slane %v4313_v1, 4 }
 0x275   :  { %v2876_v30 = vsel %vm2759_vm4, %v2875_v4, %v2874_v48  ;;  %v4423_v55 = vpop.f32.mrb[94].mxu1  ;;  %v2618_v21 = vmax.f32 %v4402_v28, 0.0  ;;  %v2266_v25 = vrot.slane %v4317_v5, 4  ;;  %v2284_v45 = vrot.slane %v4320_v42, 4 }
 0x276   :  { %v2878_v29 = vsel %vm2762_vm5, %v2877_v22, %v2876_v30  ;;  %v4429_v13 = vpop.f32.mrb[95].mxu1  ;;  %v2619_v18 = vmax.f32 %v4410_v52, 0.0  ;;  %v2249_v50 = vmax.f32 %v4294_v39, %v2248_v2  ;;  %v2279_v53 = vmax.f32 %v4313_v1, %v2278_v61 }
 0x277   :  { %v2880_v14 = vsel %vm2765_vm6, %v2879_v41, %v2878_v29  ;;  %v2267_v3 = vmax.f32 %v4317_v5, %v2266_v25  ;;  %v2285_v46 = vmax.f32 %v4320_v42, %v2284_v45  ;;  %v2272_v19 = vrot.slane %v4323_v6, 4 }
 0x278   :  { %v2882_v57 = vsel %vm2768_vm7, %v2881_v17, %v2880_v14  ;;  %v2250_v24 = vrot.slane %v2249_v50, 2  ;;  %v2280_v31 = vrot.slane %v2279_v53, 2  ;;  %v2302_v59 = vrot.slane %v4328_v27, 4 }
 0x279   :  { %v2884_v49 = vsel %vm2771_vm8, %v2883_v11, %v2882_v57  ;;  %v2268_v34 = vrot.slane %v2267_v3, 2  ;;  %v2286_v7 = vrot.slane %v2285_v46, 2  ;;  %v2273_v39 = vmax.f32 %v4323_v6, %v2272_v19 }
 0x27a   :  { %2962 = vst [vmem:[#allocation2 + $0x40] sm:$0xff] %v2884_v49  ;;  %v2290_v1 = vrot.slane %v4331_v0, 4  ;;  %v2251_v37 = vmax.f32 %v2249_v50, %v2250_v24  ;;  %v2281_v40 = vmax.f32 %v2279_v53, %v2280_v31  ;;  %v2303_v5 = vmax.f32 %v4328_v27, %v2302_v59 }
 0x27b   :  { %v2308_v42 = vrot.slane %v4334_v56, 4  ;;  %v4445_v63 = vpop.f32.mrb[96].mxu1  ;;  %v2269_v44 = vmax.f32 %v2267_v3, %v2268_v34  ;;  %v2287_v33 = vmax.f32 %v2285_v46, %v2286_v7  ;;  %v2274_v62 = vrot.slane %v2273_v39, 2 }
 0x27c   :  { %v2291_v16 = vmax.f32 %v4331_v0, %v2290_v1  ;;  %v4448_v47 = vpop.f32.mrb[97].mxu1  ;;  %v2252_v36 = vrot.slane %v2251_v37, 1  ;;  %v2282_v58 = vrot.slane %v2281_v40, 1  ;;  %v2304_v6 = vrot.slane %v2303_v5, 2 }
 0x27d   :  { %v2309_v15 = vmax.f32 %v4334_v56, %v2308_v42  ;;  %v4451_v4 = vpop.f32.mrb[98].mxu1  ;;  %v2270_v51 = vrot.slane %v2269_v44, 1  ;;  %v2288_v27 = vrot.slane %v2287_v33, 1  ;;  %v2275_v22 = vmax.f32 %v2273_v39, %v2274_v62 }
 0x27e   :  { %v2292_v48 = vrot.slane %v2291_v16, 2  ;;  %v4453_v17 = vpop.f32.mrb[99].mxu1  ;;  %v2253_v41 = vmax.f32 %v2251_v37, %v2252_v36  ;;  %v2283_v30 = vmax.f32 %v2281_v40, %v2282_v58  ;;  %v2305_v11 = vmax.f32 %v2303_v5, %v2304_v6 }
 0x27f   :  { %v2310_v2 = vrot.slane %v2309_v15, 2  ;;  %v2271_v0 = vmax.f32 %v2269_v44, %v2270_v51  ;;  %v2289_v61 = vmax.f32 %v2287_v33, %v2288_v27  ;;  %v2276_v29 = vrot.slane %v2275_v22, 1 }
 0x280   :  { %v2293_v25 = vmax.f32 %v2291_v16, %v2292_v48  ;;  %v2513_v45 = vadd.f32 %v4204_v26, %v2253_v41  ;;  %v2518_v56 = vadd.f32 %v4204_v26, %v2283_v30  ;;  %v2306_v14 = vrot.slane %v2305_v11, 1 }
 0x281   :  { %v2311_v50 = vmax.f32 %v2309_v15, %v2310_v2  ;;  %v2516_v53 = vadd.f32 %v4204_v26, %v2271_v0  ;;  %v2519_v57 = vadd.f32 %v4204_v26, %v2289_v61  ;;  %v2277_v3 = vmax.f32 %v2275_v22, %v2276_v29 }
 0x282   :  { %v2294_v46 = vrot.slane %v2293_v25, 1  ;;  %v2617_v19 = vmax.f32 %v2513_v45, 0.0  ;;  %v2622_v49 = vmax.f32 %v2518_v56, 0.0  ;;  %v2307_v24 = vmax.f32 %v2305_v11, %v2306_v14 }
 0x283   :  { %v2312_v31 = vrot.slane %v2311_v50, 1  ;;  %v4459_v59 = vpop.f32.mrb[100].mxu1  ;;  %v2620_v34 = vmax.f32 %v2516_v53, 0.0  ;;  %v2623_v7 = vmax.f32 %v2519_v57, 0.0  ;;  %v2517_v39 = vadd.f32 %v4204_v26, %v2277_v3 }
 0x284   :  { %v4462_v1 = vpop.f32.mrb[101].mxu1  ;;  %v2616_v37 = vmax.f32 %v4416_v60, 0.0  ;;  %v2885_v40 = vrot.slane %v2617_v19, 7  ;;  %v4466_v5 = vadd.f32 %v4204_v26, %v2307_v24  ;;  %v2295_v42 = vmax.f32 %v2293_v25, %v2294_v46 }
 0x285   :  { %v4468_v44 = vpop.f32.mrb[102].mxu1  ;;  %v2887_v33 = vrot.slane %v2618_v21, 6  ;;  %v2889_v62 = vrot.slane %v2619_v18, 5  ;;  %v2891_v16 = vrot.slane %v2620_v34, 4  ;;  %v2621_v36 = vmax.f32 %v2517_v39, 0.0 }
 0x286   :  { %v4474_v58 = vpop.f32.mrb[103].mxu1  ;;  %v2886_v6 = vsel %vm2753_vm2, %v2885_v40, %v2616_v37  ;;  %v2895_v60 = vrot.slane %v2622_v49, 2  ;;  %v2313_v15 = vmax.f32 %v2311_v50, %v2312_v31  ;;  %v2296_v51 = vrot.slane %v4341_v38, 4 }
 0x287   :  { %v2888_v27 = vsel %vm2756_vm3, %v2887_v33, %v2886_v6  ;;  %v2897_v22 = vrot.slane %v2623_v7, 1  ;;  %v2893_v48 = vrot.slane %v2621_v36, 3  ;;  %v2326_v28 = vrot.slane %v4364_v12, 4 }
 0x288   :  { %v2890_v21 = vsel %vm2759_vm4, %v2889_v62, %v2888_v27  ;;  %v2626_v52 = vmax.f32 %v4466_v5, 0.0  ;;  %v4483_v18 = vadd.f32 %v4204_v26, %v2295_v42  ;;  %v2297_v41 = vmax.f32 %v4341_v38, %v2296_v51 }
 0x289   :  { %v2892_v30 = vsel %vm2762_vm5, %v2891_v16, %v2890_v21  ;;  %v2327_v11 = vmax.f32 %v4364_v12, %v2326_v28  ;;  %v2314_v2 = vrot.slane %v4370_v32, 4  ;;  %v2332_v0 = vrot.slane %v4375_v43, 4 }
 0x28a   :  { %v2894_v61 = vsel %vm2765_vm6, %v2893_v48, %v2892_v30  ;;  %v2523_v29 = vadd.f32 %v4204_v26, %v2313_v15  ;;  %v2298_v25 = vrot.slane %v2297_v41, 2  ;;  %v2320_v45 = vrot.slane %v4380_v9, 4 }
 0x28b   :  { %v2896_v56 = vsel %vm2768_vm7, %v2895_v60, %v2894_v61  ;;  %v2328_v14 = vrot.slane %v2327_v11, 2  ;;  %v2315_v38 = vmax.f32 %v4370_v32, %v2314_v2  ;;  %v2333_v50 = vmax.f32 %v4375_v43, %v2332_v0 }
 0x28c   :  { %v2898_v12 = vsel %vm2771_vm8, %v2897_v22, %v2896_v56  ;;  %v2299_v53 = vmax.f32 %v2297_v41, %v2298_v25  ;;  %v2321_v57 = vmax.f32 %v4380_v9, %v2320_v45  ;;  %v2350_v3 = vrot.slane %v4386_v23, 4 }
 0x28d   :  { %2963 = vst [vmem:[#allocation2 + $0x48] sm:$0xff] %v2898_v12  ;;  %v2329_v46 = vmax.f32 %v2327_v11, %v2328_v14  ;;  %v2316_v19 = vrot.slane %v2315_v38, 2  ;;  %v2334_v49 = vrot.slane %v2333_v50, 2  ;;  %v2338_v24 = vrot.slane %v4388_v10, 4 }
 0x28e   :  { %v2300_v31 = vrot.slane %v2299_v53, 1  ;;  %v2322_v34 = vrot.slane %v2321_v57, 2  ;;  %v2351_v7 = vmax.f32 %v4386_v23, %v2350_v3  ;;  %v2356_v32 = vrot.slane %v4391_v8, 4 }
 0x28f   :  { %v2330_v43 = vrot.slane %v2329_v46, 1  ;;  %v2317_v39 = vmax.f32 %v2315_v38, %v2316_v19  ;;  %v2335_v37 = vmax.f32 %v2333_v50, %v2334_v49  ;;  %v2339_v40 = vmax.f32 %v4388_v10, %v2338_v24 }
 0x290   :  { %v2301_v9 = vmax.f32 %v2299_v53, %v2300_v31  ;;  %v2323_v5 = vmax.f32 %v2321_v57, %v2322_v34  ;;  %v2352_v42 = vrot.slane %v2351_v7, 2  ;;  %v2357_v33 = vmax.f32 %v4391_v8, %v2356_v32 }
 0x291   :  { %v2331_v62 = vmax.f32 %v2329_v46, %v2330_v43  ;;  %v2318_v16 = vrot.slane %v2317_v39, 1  ;;  %v2336_v36 = vrot.slane %v2335_v37, 1  ;;  %v2340_v6 = vrot.slane %v2339_v40, 2 }
 0x292   :  { %v2521_v60 = vadd.f32 %v4204_v26, %v2301_v9  ;;  %v2324_v15 = vrot.slane %v2323_v5, 1  ;;  %v2353_v23 = vmax.f32 %v2351_v7, %v2352_v42  ;;  %v2358_v51 = vrot.slane %v2357_v33, 2 }
 0x293   :  { %v2627_v27 = vmax.f32 %v2523_v29, 0.0  ;;  %v2526_v22 = vadd.f32 %v4204_v26, %v2331_v62  ;;  %v2319_v48 = vmax.f32 %v2317_v39, %v2318_v16  ;;  %v2337_v28 = vmax.f32 %v2335_v37, %v2336_v36 }
 0x294   :  { %v2625_v10 = vmax.f32 %v2521_v60, 0.0  ;;  %v2325_v21 = vmax.f32 %v2323_v5, %v2324_v15  ;;  %v2341_v41 = vmax.f32 %v2339_v40, %v2340_v6  ;;  %v2624_v30 = vmax.f32 %v4483_v18, 0.0 }
 0x295   :  { %v2524_v8 = vadd.f32 %v4204_v26, %v2319_v48  ;;  %v2527_v11 = vadd.f32 %v4204_v26, %v2337_v28  ;;  %v2354_v61 = vrot.slane %v2353_v23, 1  ;;  %v2359_v25 = vmax.f32 %v2357_v33, %v2358_v51 }
 0x296   :  { %v2899_v2 = vrot.slane %v2625_v10, 7  ;;  %v2525_v0 = vadd.f32 %v4204_v26, %v2325_v21  ;;  %v2901_v45 = vrot.slane %v2626_v52, 6  ;;  %v2903_v29 = vrot.slane %v2627_v27, 5 }
 0x297   :  { %v2630_v56 = vmax.f32 %v2526_v22, 0.0  ;;  %v2628_v14 = vmax.f32 %v2524_v8, 0.0  ;;  %v2631_v50 = vmax.f32 %v2527_v11, 0.0  ;;  %v2342_v53 = vrot.slane %v2341_v41, 1 }
 0x298   :  { %v2900_v38 = vsel %vm2753_vm2, %v2899_v2, %v2624_v30  ;;  %v2629_v12 = vmax.f32 %v2525_v0, 0.0  ;;  %v2355_v19 = vmax.f32 %v2353_v23, %v2354_v61  ;;  %v2360_v49 = vrot.slane %v2359_v25, 1 }
 0x299   :  { %v2902_v18 = vsel %vm2756_vm3, %v2901_v45, %v2900_v38  ;;  %v2905_v57 = vrot.slane %v2628_v14, 4  ;;  %v2909_v24 = vrot.slane %v2630_v56, 2  ;;  %v2344_v52 = vrot.slane %v4394_v35, 4 }
 0x29a   :  { %v2904_v3 = vsel %vm2759_vm4, %v2903_v29, %v2902_v18  ;;  %v2907_v46 = vrot.slane %v2629_v12, 3  ;;  %v2374_v34 = vrot.slane %v4412_v54, 4  ;;  %v2911_v7 = vrot.slane %v2631_v50, 1 }
 0x29b   :  { %v2906_v31 = vsel %vm2762_vm5, %v2905_v57, %v2904_v3  ;;  %v2343_v43 = vmax.f32 %v2341_v41, %v2342_v53  ;;  %v2362_v39 = vrot.slane %v4418_v20, 4  ;;  %v2345_v40 = vmax.f32 %v4394_v35, %v2344_v52 }
 0x29c   :  { %v2908_v32 = vsel %vm2765_vm6, %v2907_v46, %v2906_v31  ;;  %v2375_v9 = vmax.f32 %v4412_v54, %v2374_v34  ;;  %v2380_v5 = vrot.slane %v4423_v55, 4  ;;  %v2361_v33 = vmax.f32 %v2359_v25, %v2360_v49 }
 0x29d   :  { %v2910_v37 = vsel %vm2768_vm7, %v2909_v24, %v2908_v32  ;;  %v2363_v62 = vmax.f32 %v4418_v20, %v2362_v39  ;;  %v2368_v16 = vrot.slane %v4429_v13, 4  ;;  %v2346_v36 = vrot.slane %v2345_v40, 2 }
 0x29e   :  { %v2912_v42 = vsel %vm2771_vm8, %v2911_v7, %v2910_v37  ;;  %v2376_v6 = vrot.slane %v2375_v9, 2  ;;  %v2381_v60 = vmax.f32 %v4423_v55, %v2380_v5  ;;  %v2398_v15 = vrot.slane %v4445_v63, 4 }
 0x29f   :  { %2964 = vst [vmem:[#allocation2 + $0x50] sm:$0xff] %v2912_v42  ;;  %v2364_v23 = vrot.slane %v2363_v62, 2  ;;  %v2369_v35 = vmax.f32 %v4429_v13, %v2368_v16  ;;  %v2386_v54 = vrot.slane %v4448_v47, 4  ;;  %v2404_v51 = vrot.slane %v4451_v4, 4 }
 0x2a0   :  { %v2347_v27 = vmax.f32 %v2345_v40, %v2346_v36  ;;  %v2377_v22 = vmax.f32 %v2375_v9, %v2376_v6  ;;  %v2382_v48 = vrot.slane %v2381_v60, 2  ;;  %v2399_v20 = vmax.f32 %v4445_v63, %v2398_v15 }
 0x2a1   :  { %v2365_v28 = vmax.f32 %v2363_v62, %v2364_v23  ;;  %v2370_v10 = vrot.slane %v2369_v35, 2  ;;  %v2387_v21 = vmax.f32 %v4448_v47, %v2386_v54  ;;  %v2405_v55 = vmax.f32 %v4451_v4, %v2404_v51 }
 0x2a2   :  { %v2348_v41 = vrot.slane %v2347_v27, 1  ;;  %v2378_v30 = vrot.slane %v2377_v22, 1  ;;  %v2383_v8 = vmax.f32 %v2381_v60, %v2382_v48  ;;  %v2400_v11 = vrot.slane %v2399_v20, 2 }
 0x2a3   :  { %v2530_v13 = vadd.f32 %v4204_v26, %v2355_v19  ;;  %v2531_v2 = vadd.f32 %v4204_v26, %v2361_v33  ;;  %v2366_v0 = vrot.slane %v2365_v28, 1  ;;  %v2371_v61 = vmax.f32 %v2369_v35, %v2370_v10 }
 0x2a4   :  { %v2349_v25 = vmax.f32 %v2347_v27, %v2348_v41  ;;  %v2379_v45 = vmax.f32 %v2377_v22, %v2378_v30  ;;  %v2384_v29 = vrot.slane %v2383_v8, 1  ;;  %v2388_v63 = vrot.slane %v2387_v21, 2 }
 0x2a5   :  { %v2367_v56 = vmax.f32 %v2365_v28, %v2366_v0  ;;  %v2372_v14 = vrot.slane %v2371_v61, 1  ;;  %v2401_v38 = vmax.f32 %v2399_v20, %v2400_v11  ;;  %v2406_v47 = vrot.slane %v2405_v55, 2 }
 0x2a6   :  { %v2528_v4 = vadd.f32 %v4204_v26, %v2343_v43  ;;  %v2529_v50 = vadd.f32 %v4204_v26, %v2349_v25  ;;  %v2534_v12 = vadd.f32 %v4204_v26, %v2379_v45  ;;  %v2385_v53 = vmax.f32 %v2383_v8, %v2384_v29 }
 0x2a7   :  { %v2634_v18 = vmax.f32 %v2530_v13, 0.0  ;;  %v2532_v57 = vadd.f32 %v4204_v26, %v2367_v56  ;;  %v2373_v3 = vmax.f32 %v2371_v61, %v2372_v14  ;;  %v2635_v46 = vmax.f32 %v2531_v2, 0.0 }
 0x2a8   :  { %v2633_v19 = vmax.f32 %v2529_v50, 0.0  ;;  %v2535_v49 = vadd.f32 %v4204_v26, %v2385_v53  ;;  %v2389_v24 = vmax.f32 %v2387_v21, %v2388_v63  ;;  %v2402_v34 = vrot.slane %v2401_v38, 1  ;;  %v3539_v63 = vld [vmem:[%s4584_s4] ss:$0 sm:$0xff]  ;;  %s3564_s4 = smov [#allocation2]  }
 0x2a9   :  { %v2636_v31 = vmax.f32 %v2532_v57, 0.0  ;;  %v2533_v52 = vadd.f32 %v4204_v26, %v2373_v3  ;;  %v2407_v7 = vmax.f32 %v2405_v55, %v2406_v47  ;;  %v2632_v32 = vmax.f32 %v2528_v4, 0.0  ;;  %s2972_s3 = sshll.u32 %s3564_s4, 4  ;;  %s2973_s3 = int_to_ptr.vmem [resolvable:$true] %s2972_s3 }
 0x2aa   :  { %v2913_v43 = vrot.slane %v2633_v19, 7  ;;  %v2638_v39 = vmax.f32 %v2534_v12, 0.0  ;;  %v2915_v37 = vrot.slane %v2634_v18, 6  ;;  %v2639_v9 = vmax.f32 %v2535_v49, 0.0  ;;  %s3540_s8 = scalar_lea.vmem %s2973_s3, 1664  ;;  %p3545_p1 = scmp.lt.s32.totalorder %s2973_s3, %s2973_s3 }
 0x2ab   :  { %v2919_v40 = vrot.slane %v2636_v31, 4  ;;  %v2637_v5 = vmax.f32 %v2533_v52, 0.0  ;;  %v2917_v42 = vrot.slane %v2635_v46, 5  ;;  %v2390_v62 = vrot.slane %v2389_v24, 1  ;;  %p3541_p0 = scmp.ne.s32.totalorder %s2973_s3, %s3540_s8  ;;  %p3546_p2 = scmp.lt.s32.totalorder %s3540_s8, %s3540_s8 }
 0x2ac   :  { %v2914_v33 = vsel %vm2753_vm2, %v2913_v43, %v2632_v32  ;;  %v2392_v16 = vrot.slane %v4453_v17, 4  ;;  %v2403_v60 = vmax.f32 %v2401_v38, %v2402_v34  ;;  %v2408_v26 = vrot.slane %v2407_v7, 1 }
 0x2ad   :  { %v2916_v36 = vsel %vm2756_vm3, %v2915_v37, %v2914_v33  ;;  %v2921_v6 = vrot.slane %v2637_v5, 3  ;;  %v2923_v15 = vrot.slane %v2638_v39, 2  ;;  %v2422_v54 = vrot.slane %v4459_v59, 4  ;;  %p3547_p3 = por %p3546_p2, %p3545_p1 }
 0x2ae   :  { %v2918_v23 = vsel %vm2759_vm4, %v2917_v42, %v2916_v36  ;;  %v2393_v35 = vmax.f32 %v4453_v17, %v2392_v16  ;;  %v2925_v27 = vrot.slane %v2639_v9, 1  ;;  %v2410_v22 = vrot.slane %v4462_v1, 4 }
 0x2af   :  { %v2920_v51 = vsel %vm2762_vm5, %v2919_v40, %v2918_v23  ;;  %v2428_v48 = vrot.slane %v4468_v44, 4  ;;  %v2423_v10 = vmax.f32 %v4459_v59, %v2422_v54  ;;  %v2416_v21 = vrot.slane %v4474_v58, 4  ;;  %p3548_p4 = pnand %p3547_p3, %p3541_p0 }
 0x2b0   :  { %v2922_v20 = vsel %vm2765_vm6, %v2921_v6, %v2920_v51  ;;  %v2394_v28 = vrot.slane %v2393_v35, 2  ;;  %v2409_v41 = vmax.f32 %v2407_v7, %v2408_v26  ;;  %v2411_v17 = vmax.f32 %v4462_v1, %v2410_v22 }
 0x2b1   :  { %v2924_v55 = vsel %vm2768_vm7, %v2923_v15, %v2922_v20  ;;  %v2429_v30 = vmax.f32 %v4468_v44, %v2428_v48  ;;  %v2424_v13 = vrot.slane %v2423_v10, 2  ;;  %v2417_v2 = vmax.f32 %v4474_v58, %v2416_v21 }
 0x2b2   :  { %v2926_v8 = vsel %vm2771_vm8, %v2925_v27, %v2924_v55  ;;  %v2395_v11 = vmax.f32 %v2393_v35, %v2394_v28  ;;  %v2412_v0 = vrot.slane %v2411_v17, 2  ;;  %v2391_v25 = vmax.f32 %v2389_v24, %v2390_v62 }
 0x2b3   :  { %2965 = vst [vmem:[#allocation2 + $0x58] sm:$0xff] %v2926_v8  ;;  %v2430_v61 = vrot.slane %v2429_v30, 2  ;;  %v2425_v45 = vmax.f32 %v2423_v10, %v2424_v13  ;;  %v2418_v29 = vrot.slane %v2417_v2, 2  ;;  %v2538_v1 = vadd.f32 %v3539_v63, %v2403_v60 }
 0x2b4   :  { %v2396_v59 = vrot.slane %v2395_v11, 1  ;;  %v2413_v56 = vmax.f32 %v2411_v17, %v2412_v0  ;;  %v2539_v14 = vadd.f32 %v3539_v63, %v2409_v41  ;;  %v2536_v12 = vadd.f32 %v3539_v63, %v2391_v25 }
 0x2b5   :  { %v2431_v44 = vmax.f32 %v2429_v30, %v2430_v61  ;;  %v2426_v47 = vrot.slane %v2425_v45, 1  ;;  %v2419_v4 = vmax.f32 %v2417_v2, %v2418_v29  ;;  %v2642_v3 = vmax.f32 %v2538_v1, 0.0 }
 0x2b6   :  { %v2397_v38 = vmax.f32 %v2395_v11, %v2396_v59  ;;  %v2414_v50 = vrot.slane %v2413_v56, 1  ;;  %v2643_v49 = vmax.f32 %v2539_v14, 0.0  ;;  %v2640_v32 = vmax.f32 %v2536_v12, 0.0 }
 0x2b7   :  { %v2432_v58 = vrot.slane %v2431_v44, 1  ;;  %v2427_v18 = vmax.f32 %v2425_v45, %v2426_v47  ;;  %v2420_v57 = vrot.slane %v2419_v4, 1  ;;  %v2929_v37 = vrot.slane %v2642_v3, 6 }
 0x2b8   :  { %v2537_v53 = vadd.f32 %v3539_v63, %v2397_v38  ;;  %v2415_v46 = vmax.f32 %v2413_v56, %v2414_v50  ;;  %v2931_v5 = vrot.slane %v2643_v49, 5 }
 0x2b9   :  { %v2433_v19 = vmax.f32 %v2431_v44, %v2432_v58  ;;  %v2542_v31 = vadd.f32 %v3539_v63, %v2427_v18  ;;  %v2421_v52 = vmax.f32 %v2419_v4, %v2420_v57 }
 0x2ba   :  { %v2641_v24 = vmax.f32 %v2537_v53, 0.0  ;;  %v2540_v34 = vadd.f32 %v3539_v63, %v2415_v46 }
 0x2bb   :  { %v2543_v7 = vadd.f32 %v3539_v63, %v2433_v19  ;;  %v2541_v39 = vadd.f32 %v3539_v63, %v2421_v52  ;;  %v2646_v40 = vmax.f32 %v2542_v31, 0.0 }
 0x2bc   :  { %v2927_v43 = vrot.slane %v2641_v24, 7  ;;  %v2644_v9 = vmax.f32 %v2540_v34, 0.0 }
 0x2bd   :  { %v2647_v33 = vmax.f32 %v2543_v7, 0.0  ;;  %v2645_v62 = vmax.f32 %v2541_v39, 0.0  ;;  %v2937_v26 = vrot.slane %v2646_v40, 2 }
 0x2be   :  { %v2928_v42 = vsel %vm2753_vm2, %v2927_v43, %v2640_v32  ;;  %v2933_v36 = vrot.slane %v2644_v9, 4 }
 0x2bf   :  { %v2930_v16 = vsel %vm2756_vm3, %v2929_v37, %v2928_v42  ;;  %v2935_v60 = vrot.slane %v2645_v62, 3  ;;  %v2939_v23 = vrot.slane %v2647_v33, 1 }
 0x2c0   :  { %v2932_v6 = vsel %vm2759_vm4, %v2931_v5, %v2930_v16 }
 0x2c1   :  { %v2934_v15 = vsel %vm2762_vm5, %v2933_v36, %v2932_v6 }
 0x2c2   :  { %v2936_v35 = vsel %vm2765_vm6, %v2935_v60, %v2934_v15 }
 0x2c3   :  { %v2938_v54 = vsel %vm2768_vm7, %v2937_v26, %v2936_v35 }
 0x2c4   :  { %v2940_v51 = vsel %vm2771_vm8, %v2939_v23, %v2938_v54 }
 0x2c5   :  { %2966 = vst [vmem:[#allocation2 + $0x60] sm:$0xff] %v2940_v51 }
 0x2c6   :  { %3551 = shalt.err (!%p3548_p4)
}
 0x2c7   :  { %s3552_s11 = scalar_lea.hbm %s4585_s5, 1664 }
 0x2c8   :  { %p3553_p5 = scmp.ne.s32.totalorder %s4585_s5, %s3552_s11  ;;  %p3556_p6 = scmp.lt.u32.totalorder %s3552_s11, %s4585_s5 }
 0x2ca   :  { %p3558_p7 = pnand %p3556_p6, %p3553_p5 }
 0x2cc   :  { %3561 = shalt.err (!%p3558_p7)
}
 0x2cd   :  { %s3565_s16 = smov 128   ;;  %s3566_s17 = smov 8  }
 0x2ce   :  { %2978 = dma.vmem_to_hbm [thread:$0]  %s2973_s3, 1664, %s4585_s5, [#allocation3], %s3565_s16, %s3565_s16, %s3566_s17  }
 0x2cf   :  { %3562 = dma.done.wait [#allocation3], 1664  }
 0x2d0   :  { %3563 = vsyncadd [#allocation3], 4294965632 }
 0x2d1   :  { %2982 = vsyncpa [#allocation3], 1 }

</bundles_post_ra>
